<compile_context>
chip_gen: v7x
topology: tpu7x:2x2x1
jax: 0.10.0
libtpu: 0.0.40
codegen_flags: <defaults>
</compile_context>

<pallas_src>
import functools

import jax
import jax.numpy as jnp
import numpy as np
from jax.experimental import pallas as pl
from jax.experimental.pallas import tpu as pltpu  # noqa: F401  (TPU backend)


_COMPUTE_DT = jnp.bfloat16      # MXU operand dtype; accumulation stays f32


def _conv_out_dims(dims, stride):
    # kernel=3, padding=1  ->  out = (in - 1)//stride + 1
    return tuple((s - 1) // st + 1 for s, st in zip(dims, stride))


# ----------------------------------------------------------------------------
# Kernel: whole 5-layer discriminator in a single grid step (batch in M).
# ----------------------------------------------------------------------------
def _discriminator_kernel(x_ref, w_ref, ss_ref, sgn_ref, out_ref, *, layer_specs):
    n_layers = len(layer_specs)
    h = x_ref[...]                                           # (B, K0) bf16
    for li, (roff, kk, nn, lrelu) in enumerate(layer_specs):
        a = w_ref[pl.ds(roff, kk), pl.ds(0, nn)]             # (K, N) bf16
        acc = jnp.dot(h, a, preferred_element_type=jnp.float32)   # (B, N) f32
        scale = ss_ref[pl.ds(li, 1), pl.ds(0, nn)]                 # (1, N) f32
        shift = ss_ref[pl.ds(n_layers + li, 1), pl.ds(0, nn)]      # (1, N) f32
        y = acc * scale + shift                              # bias / folded BN
        if lrelu:
            y = jnp.where(y >= 0, y, 0.2 * y)                # LeakyReLU(0.2)
        if li == n_layers - 1:
            out_ref[...] = (y * sgn_ref[...]).astype(out_ref.dtype)
        else:
            h = y.astype(_COMPUTE_DT)


# ----------------------------------------------------------------------------
# Deterministic parameter construction (mirrors the module's __init__)
# ----------------------------------------------------------------------------
def build_params(key, input_nc=1, ndf=8, n_layers=3):
    input_nc *= 2  # compare-concat doubles the input channels
    specs = [dict(cin=input_nc, cout=ndf, stride=(2, 2, 2),
                  bias=True, bn=False, lrelu=True)]
    nf_mult = 1
    for n in range(1, n_layers):
        nf_mult_prev = nf_mult
        nf_mult = min(2 ** n, 8)
        specs.append(dict(cin=ndf * nf_mult_prev, cout=ndf * nf_mult,
                          stride=(2, 2, 2) if n == 1 else (1, 2, 2),
                          bias=False, bn=True, lrelu=True))
    nf_mult_prev = nf_mult
    nf_mult = min(2 ** n_layers, 8)
    specs.append(dict(cin=ndf * nf_mult_prev, cout=ndf * nf_mult,
                      stride=(1, 1, 1), bias=False, bn=True, lrelu=True))
    specs.append(dict(cin=ndf * nf_mult, cout=1, stride=(1, 1, 1),
                      bias=True, bn=False, lrelu=False))

    params = []
    for spec in specs:
        key, k1, k2, k3, k4, k5, k6 = jax.random.split(key, 7)
        cin, cout = spec['cin'], spec['cout']
        fan_in = cin * 27
        # weight in DHWIO layout: (kd, kh, kw, Cin, Cout)
        w = jax.random.normal(k1, (3, 3, 3, cin, cout), jnp.float32)
        w = w / jnp.sqrt(jnp.float32(fan_in))
        bias = (0.1 * jax.random.normal(k2, (cout,), jnp.float32)
                if spec['bias'] else jnp.zeros((cout,), jnp.float32))
        if spec['bn']:
            gamma = 1.0 + 0.1 * jax.random.normal(k3, (cout,), jnp.float32)
            beta = 0.1 * jax.random.normal(k4, (cout,), jnp.float32)
            rmean = 0.1 * jax.random.normal(k5, (cout,), jnp.float32)
            rvar = 1.0 + 0.1 * jax.random.uniform(k6, (cout,), jnp.float32)
            scale = gamma / jnp.sqrt(rvar + 1e-5)
            shift = beta + (bias - rmean) * scale
        else:
            scale = jnp.ones((cout,), jnp.float32)
            shift = bias
        params.append(dict(stride=spec['stride'], lrelu=spec['lrelu'],
                           w_dhwio=w, scale=scale, shift=shift))
    return params


# ----------------------------------------------------------------------------
# One-time packing: fold conv taps + zero padding into dense per-layer
# matrices, tile the per-channel affines, and concatenate everything into
# two kernel inputs (weights bf16, scale/shift f32).
# ----------------------------------------------------------------------------
def pack_dense_params(params, in_dims):
    dims = in_dims
    mats, scales, shifts, geo = [], [], [], []
    for p in params:
        w = np.asarray(p['w_dhwio'], np.float32)          # (3,3,3,Cin,Cout)
        cin, cout = w.shape[3], w.shape[4]
        D, H, W = dims
        sd, sh, sw = p['stride']
        Do, Ho, Wo = _conv_out_dims(dims, p['stride'])
        Mi, Mo = D * H * W, Do * Ho * Wo
        A = np.zeros((Mi * cin, Mo * cout), np.float32)
        for od in range(Do):
            for oh in range(Ho):
                for ow in range(Wo):
                    mo = (od * Ho + oh) * Wo + ow
                    for kd in range(3):
                        idd = od * sd + kd - 1
                        if not 0 <= idd < D:
                            continue
                        for kh in range(3):
                            ih = oh * sh + kh - 1
                            if not 0 <= ih < H:
                                continue
                            for kw in range(3):
                                iw = ow * sw + kw - 1
                                if not 0 <= iw < W:
                                    continue
                                mi = (idd * H + ih) * W + iw
                                A[mi * cin:(mi + 1) * cin,
                                  mo * cout:(mo + 1) * cout] += w[kd, kh, kw]
        mats.append(A)
        scales.append(np.tile(np.asarray(p['scale'], np.float32), Mo))
        shifts.append(np.tile(np.asarray(p['shift'], np.float32), Mo))
        geo.append(dict(K=Mi * cin, N=Mo * cout, lrelu=p['lrelu'],
                        out_dims=(Do, Ho, Wo), cout=cout))
        dims = (Do, Ho, Wo)

    pack_lanes = max(g['N'] for g in geo)                  # 512 here
    rows, layer_specs, roff = [], [], 0
    ss = np.zeros((2 * len(geo), pack_lanes), np.float32)
    for li, (A, g) in enumerate(zip(mats, geo)):
        pad = np.zeros((g['K'], pack_lanes), np.float32)
        pad[:, :g['N']] = A
        rows.append(pad)
        layer_specs.append((roff, g['K'], g['N'], g['lrelu']))
        ss[li, :g['N']] = scales[li]
        ss[len(geo) + li, :g['N']] = shifts[li]
        roff += g['K']

    w_pack = jnp.asarray(np.concatenate(rows, axis=0)).astype(_COMPUTE_DT)
    ss_pack = jnp.asarray(ss)                              # (2*L, pack_lanes) f32
    return dict(w_pack=w_pack, ss_pack=ss_pack,
                layer_specs=tuple(layer_specs),
                out_dims=geo[-1]['out_dims'], cout_last=geo[-1]['cout'],
                in_dims=tuple(in_dims))


# ----------------------------------------------------------------------------
# Forward passes
# ----------------------------------------------------------------------------
def discriminator_forward(target, recon, packed, orders):
    """target, recon: NCDHW f32; orders: (B,1,1,1,1) bool. Returns NCDHW f32."""
    B, C, D, H, W = target.shape
    assert (D, H, W) == packed['in_dims']

    t = jnp.transpose(target, (0, 2, 3, 4, 1))             # -> NDHWC
    r = jnp.transpose(recon, (0, 2, 3, 4, 1))
    x = jnp.where(orders, t, r)
    y = jnp.where(orders, r, t)
    h0 = jnp.concatenate([x, y], axis=-1)                  # (B,D,H,W,2C)
    h0 = h0.reshape(B, D * H * W * 2 * C).astype(_COMPUTE_DT)
    signs = jnp.where(orders.reshape(B, 1), 1.0, -1.0).astype(jnp.float32)

    layer_specs = packed['layer_specs']
    n_last = layer_specs[-1][2]
    w_pack, ss_pack = packed['w_pack'], packed['ss_pack']

    out = pl.pallas_call(
        functools.partial(_discriminator_kernel, layer_specs=layer_specs),
        out_shape=jax.ShapeDtypeStruct((B, n_last), jnp.float32),
        grid=(1,),
        in_specs=[
            pl.BlockSpec(h0.shape, lambda i: (0, 0)),
            pl.BlockSpec(w_pack.shape, lambda i: (0, 0)),
            pl.BlockSpec(ss_pack.shape, lambda i: (0, 0)),
            pl.BlockSpec(signs.shape, lambda i: (0, 0)),
        ],
        out_specs=pl.BlockSpec((B, n_last), lambda i: (0, 0)),
    )(h0, w_pack, ss_pack, signs)

    Do, Ho, Wo = packed['out_dims']
    out = out.reshape(B, Do, Ho, Wo, packed['cout_last'])
    return jnp.transpose(out, (0, 4, 1, 2, 3))             # -> NCDHW


def ref_forward(target, recon, params, orders):
    """Plain-JAX reference (lax.conv) with matching bf16 rounding points."""
    t = jnp.transpose(target, (0, 2, 3, 4, 1))
    r = jnp.transpose(recon, (0, 2, 3, 4, 1))
    x = jnp.where(orders, t, r)
    y = jnp.where(orders, r, t)
    h = jnp.concatenate([x, y], axis=-1)
    for p in params:
        h = jax.lax.conv_general_dilated(
            h.astype(_COMPUTE_DT), p['w_dhwio'].astype(_COMPUTE_DT),
            window_strides=p['stride'], padding=[(1, 1)] * 3,
            dimension_numbers=('NDHWC', 'DHWIO', 'NDHWC'),
            preferred_element_type=jnp.float32)
        h = h * p['scale'] + p['shift']
        if p['lrelu']:
            h = jnp.where(h >= 0, h, 0.2 * h)
    h = jnp.where(orders, h, -h)
    return jnp.transpose(h, (0, 4, 1, 2, 3))


# ----------------------------------------------------------------------------
if __name__ == "__main__":
    key = jax.random.PRNGKey(0)
    k_t, k_r, k_o, k_p = jax.random.split(key, 4)

    B, C, D, H, W = 2, 1, 8, 8, 8
    target = jax.random.normal(k_t, (B, C, D, H, W), jnp.float32)
    recon = jax.random.normal(k_r, (B, C, D, H, W), jnp.float32)
    # torch.rand(...) < 0.5 -> deterministic JAX equivalent
    orders = jax.random.uniform(k_o, (B, 1, 1, 1, 1)) < 0.5

    params = build_params(k_p, input_nc=C, ndf=8, n_layers=3)
    packed = pack_dense_params(params, (D, H, W))

    out = discriminator_forward(target, recon, packed, orders)
    out = jax.block_until_ready(out)

    ref = ref_forward(target, recon, params, orders)
    np.testing.assert_allclose(np.asarray(out), np.asarray(ref),
                               rtol=2e-3, atol=2e-3)
    print("KERNEL_OK")
</pallas_src>

<mosaic_0001>
module attributes {stable_mosaic.version = 11 : i64} {
  func.func @_discriminator_kernel(%arg0: i32, %arg1: memref<2x1024xbf16, #tpu.memory_space<vmem>>, %arg2: memref<1856x512xbf16, #tpu.memory_space<vmem>>, %arg3: memref<10x512xf32, #tpu.memory_space<vmem>>, %arg4: memref<2x1xf32, #tpu.memory_space<vmem>>, %arg5: memref<2x2xf32, #tpu.memory_space<vmem>>) attributes {dimension_semantics = [#tpu.dimension_semantics<arbitrary>], iteration_bounds = array<i64: 1>, scalar_prefetch = 0 : i64, scratch_operands = 0 : i64, tpu.core_type = #tpu.core_type<tc>, window_params = [{pipeline_mode = #tpu.pipeline_mode<synchronous>, transform_indices = @transform_0, window_bounds = array<i64: 2, 1024>}, {pipeline_mode = #tpu.pipeline_mode<synchronous>, transform_indices = @transform_1, window_bounds = array<i64: 1856, 512>}, {pipeline_mode = #tpu.pipeline_mode<synchronous>, transform_indices = @transform_2, window_bounds = array<i64: 10, 512>}, {pipeline_mode = #tpu.pipeline_mode<synchronous>, transform_indices = @transform_3, window_bounds = array<i64: 2, 1>}, {pipeline_mode = #tpu.pipeline_mode<synchronous>, transform_indices = @transform_4, window_bounds = array<i64: 2, 2>}]} {
    %c0 = arith.constant 0 : index
    %c0_0 = arith.constant 0 : index
    %0 = vector.load %arg1[%c0, %c0_0] : memref<2x1024xbf16, #tpu.memory_space<vmem>>, vector<2x1024xbf16>
    %c0_1 = arith.constant 0 : index
    %c0_2 = arith.constant 0 : index
    %1 = vector.load %arg2[%c0_1, %c0_2] : memref<1856x512xbf16, #tpu.memory_space<vmem>>, vector<1024x512xbf16>
    %cst = arith.constant dense<0.000000e+00> : vector<2x512xf32>
    %2 = tpu.matmul %0, %1, %cst {dimension_numbers = #tpu.dot_dimension_numbers<[1], [0], [0], [1], [0, 0, 1, 1], [], []>} : vector<2x1024xbf16>, vector<1024x512xbf16>, vector<2x512xf32> -> vector<2x512xf32>
    %c0_3 = arith.constant 0 : index
    %c0_4 = arith.constant 0 : index
    %3 = vector.load %arg3[%c0_3, %c0_4] : memref<10x512xf32, #tpu.memory_space<vmem>>, vector<1x512xf32>
    %c5 = arith.constant 5 : index
    %c0_5 = arith.constant 0 : index
    %4 = vector.load %arg3[%c5, %c0_5] : memref<10x512xf32, #tpu.memory_space<vmem>>, vector<1x512xf32>
    %5 = vector.broadcast %3 : vector<1x512xf32> to vector<2x512xf32>
    %6 = arith.mulf %2, %5 : vector<2x512xf32>
    %7 = vector.broadcast %4 : vector<1x512xf32> to vector<2x512xf32>
    %8 = arith.addf %6, %7 : vector<2x512xf32>
    %cst_6 = arith.constant 0.000000e+00 : f32
    %9 = vector.broadcast %cst_6 : f32 to vector<2x512xf32>
    %10 = arith.cmpf oge, %8, %9 : vector<2x512xf32>
    %cst_7 = arith.constant 2.000000e-01 : f32
    %11 = vector.broadcast %cst_7 : f32 to vector<2x512xf32>
    %12 = arith.mulf %11, %8 : vector<2x512xf32>
    %13 = arith.select %10, %8, %12 : vector<2x512xi1>, vector<2x512xf32>
    %14 = arith.truncf %13 : vector<2x512xf32> to vector<2x512xbf16>
    %c1024 = arith.constant 1024 : index
    %c0_8 = arith.constant 0 : index
    %15 = vector.load %arg2[%c1024, %c0_8] : memref<1856x512xbf16, #tpu.memory_space<vmem>>, vector<512x128xbf16>
    %cst_9 = arith.constant dense<0.000000e+00> : vector<2x128xf32>
    %16 = tpu.matmul %14, %15, %cst_9 {dimension_numbers = #tpu.dot_dimension_numbers<[1], [0], [0], [1], [0, 0, 1, 1], [], []>} : vector<2x512xbf16>, vector<512x128xbf16>, vector<2x128xf32> -> vector<2x128xf32>
    %c1 = arith.constant 1 : index
    %c0_10 = arith.constant 0 : index
    %17 = vector.load %arg3[%c1, %c0_10] : memref<10x512xf32, #tpu.memory_space<vmem>>, vector<1x128xf32>
    %c6 = arith.constant 6 : index
    %c0_11 = arith.constant 0 : index
    %18 = vector.load %arg3[%c6, %c0_11] : memref<10x512xf32, #tpu.memory_space<vmem>>, vector<1x128xf32>
    %19 = vector.broadcast %17 : vector<1x128xf32> to vector<2x128xf32>
    %20 = arith.mulf %16, %19 : vector<2x128xf32>
    %21 = vector.broadcast %18 : vector<1x128xf32> to vector<2x128xf32>
    %22 = arith.addf %20, %21 : vector<2x128xf32>
    %cst_12 = arith.constant 0.000000e+00 : f32
    %23 = vector.broadcast %cst_12 : f32 to vector<2x128xf32>
    %24 = arith.cmpf oge, %22, %23 : vector<2x128xf32>
    %cst_13 = arith.constant 2.000000e-01 : f32
    %25 = vector.broadcast %cst_13 : f32 to vector<2x128xf32>
    %26 = arith.mulf %25, %22 : vector<2x128xf32>
    %27 = arith.select %24, %22, %26 : vector<2x128xi1>, vector<2x128xf32>
    %28 = arith.truncf %27 : vector<2x128xf32> to vector<2x128xbf16>
    %c1536 = arith.constant 1536 : index
    %c0_14 = arith.constant 0 : index
    %29 = vector.load %arg2[%c1536, %c0_14] : memref<1856x512xbf16, #tpu.memory_space<vmem>>, vector<128x64xbf16>
    %cst_15 = arith.constant dense<0.000000e+00> : vector<2x64xf32>
    %30 = tpu.matmul %28, %29, %cst_15 {dimension_numbers = #tpu.dot_dimension_numbers<[1], [0], [0], [1], [0, 0, 1, 1], [], []>} : vector<2x128xbf16>, vector<128x64xbf16>, vector<2x64xf32> -> vector<2x64xf32>
    %c2 = arith.constant 2 : index
    %c0_16 = arith.constant 0 : index
    %31 = vector.load %arg3[%c2, %c0_16] : memref<10x512xf32, #tpu.memory_space<vmem>>, vector<1x64xf32>
    %c7 = arith.constant 7 : index
    %c0_17 = arith.constant 0 : index
    %32 = vector.load %arg3[%c7, %c0_17] : memref<10x512xf32, #tpu.memory_space<vmem>>, vector<1x64xf32>
    %33 = vector.broadcast %31 : vector<1x64xf32> to vector<2x64xf32>
    %34 = arith.mulf %30, %33 : vector<2x64xf32>
    %35 = vector.broadcast %32 : vector<1x64xf32> to vector<2x64xf32>
    %36 = arith.addf %34, %35 : vector<2x64xf32>
    %cst_18 = arith.constant 0.000000e+00 : f32
    %37 = vector.broadcast %cst_18 : f32 to vector<2x64xf32>
    %38 = arith.cmpf oge, %36, %37 : vector<2x64xf32>
    %cst_19 = arith.constant 2.000000e-01 : f32
    %39 = vector.broadcast %cst_19 : f32 to vector<2x64xf32>
    %40 = arith.mulf %39, %36 : vector<2x64xf32>
    %41 = arith.select %38, %36, %40 : vector<2x64xi1>, vector<2x64xf32>
    %42 = arith.truncf %41 : vector<2x64xf32> to vector<2x64xbf16>
    %c1664 = arith.constant 1664 : index
    %c0_20 = arith.constant 0 : index
    %43 = vector.load %arg2[%c1664, %c0_20] : memref<1856x512xbf16, #tpu.memory_space<vmem>>, vector<64x128xbf16>
    %cst_21 = arith.constant dense<0.000000e+00> : vector<2x128xf32>
    %44 = tpu.matmul %42, %43, %cst_21 {dimension_numbers = #tpu.dot_dimension_numbers<[1], [0], [0], [1], [0, 0, 1, 1], [], []>} : vector<2x64xbf16>, vector<64x128xbf16>, vector<2x128xf32> -> vector<2x128xf32>
    %c3 = arith.constant 3 : index
    %c0_22 = arith.constant 0 : index
    %45 = vector.load %arg3[%c3, %c0_22] : memref<10x512xf32, #tpu.memory_space<vmem>>, vector<1x128xf32>
    %c8 = arith.constant 8 : index
    %c0_23 = arith.constant 0 : index
    %46 = vector.load %arg3[%c8, %c0_23] : memref<10x512xf32, #tpu.memory_space<vmem>>, vector<1x128xf32>
    %47 = vector.broadcast %45 : vector<1x128xf32> to vector<2x128xf32>
    %48 = arith.mulf %44, %47 : vector<2x128xf32>
    %49 = vector.broadcast %46 : vector<1x128xf32> to vector<2x128xf32>
    %50 = arith.addf %48, %49 : vector<2x128xf32>
    %cst_24 = arith.constant 0.000000e+00 : f32
    %51 = vector.broadcast %cst_24 : f32 to vector<2x128xf32>
    %52 = arith.cmpf oge, %50, %51 : vector<2x128xf32>
    %cst_25 = arith.constant 2.000000e-01 : f32
    %53 = vector.broadcast %cst_25 : f32 to vector<2x128xf32>
    %54 = arith.mulf %53, %50 : vector<2x128xf32>
    %55 = arith.select %52, %50, %54 : vector<2x128xi1>, vector<2x128xf32>
    %56 = arith.truncf %55 : vector<2x128xf32> to vector<2x128xbf16>
    %c1728 = arith.constant 1728 : index
    %c0_26 = arith.constant 0 : index
    %57 = vector.load %arg2[%c1728, %c0_26] : memref<1856x512xbf16, #tpu.memory_space<vmem>>, vector<128x2xbf16>
    %cst_27 = arith.constant dense<0.000000e+00> : vector<2x2xf32>
    %58 = tpu.matmul %56, %57, %cst_27 {dimension_numbers = #tpu.dot_dimension_numbers<[1], [0], [0], [1], [0, 0, 1, 1], [], []>} : vector<2x128xbf16>, vector<128x2xbf16>, vector<2x2xf32> -> vector<2x2xf32>
    %c4 = arith.constant 4 : index
    %c0_28 = arith.constant 0 : index
    %59 = vector.load %arg3[%c4, %c0_28] : memref<10x512xf32, #tpu.memory_space<vmem>>, vector<1x2xf32>
    %c9 = arith.constant 9 : index
    %c0_29 = arith.constant 0 : index
    %60 = vector.load %arg3[%c9, %c0_29] : memref<10x512xf32, #tpu.memory_space<vmem>>, vector<1x2xf32>
    %61 = vector.broadcast %59 : vector<1x2xf32> to vector<2x2xf32>
    %62 = arith.mulf %58, %61 : vector<2x2xf32>
    %63 = vector.broadcast %60 : vector<1x2xf32> to vector<2x2xf32>
    %64 = arith.addf %62, %63 : vector<2x2xf32>
    %c0_30 = arith.constant 0 : index
    %c0_31 = arith.constant 0 : index
    %65 = vector.load %arg4[%c0_30, %c0_31] : memref<2x1xf32, #tpu.memory_space<vmem>>, vector<2x1xf32>
    %66 = vector.broadcast %65 : vector<2x1xf32> to vector<2x2xf32>
    %67 = arith.mulf %64, %66 : vector<2x2xf32>
    %c0_32 = arith.constant 0 : index
    %c0_33 = arith.constant 0 : index
    %68 = vector.load %arg5[%c0_32, %c0_33] : memref<2x2xf32, #tpu.memory_space<vmem>>, vector<2x2xf32>
    tpu.vector_store %arg5[%c0_32, %c0_33], %67 {strides = array<i32>} : memref<2x2xf32, #tpu.memory_space<vmem>>, vector<2x2xf32>,
    return
  }
  func.func @transform_0(%arg0: i32) -> (i32, i32) {
    %c0_i32 = arith.constant 0 : i32
    %c0_i32_0 = arith.constant 0 : i32
    %c0_i32_1 = arith.constant 0 : i32
    return %c0_i32, %c0_i32_0 : i32, i32
  }
  func.func @transform_1(%arg0: i32) -> (i32, i32) {
    %c0_i32 = arith.constant 0 : i32
    %c0_i32_0 = arith.constant 0 : i32
    %c0_i32_1 = arith.constant 0 : i32
    return %c0_i32, %c0_i32_0 : i32, i32
  }
  func.func @transform_2(%arg0: i32) -> (i32, i32) {
    %c0_i32 = arith.constant 0 : i32
    %c0_i32_0 = arith.constant 0 : i32
    %c0_i32_1 = arith.constant 0 : i32
    return %c0_i32, %c0_i32_0 : i32, i32
  }
  func.func @transform_3(%arg0: i32) -> (i32, i32) {
    %c0_i32 = arith.constant 0 : i32
    %c0_i32_0 = arith.constant 0 : i32
    %c0_i32_1 = arith.constant 0 : i32
    return %c0_i32, %c0_i32_0 : i32, i32
  }
  func.func @transform_4(%arg0: i32) -> (i32, i32) {
    %c0_i32 = arith.constant 0 : i32
    %c0_i32_0 = arith.constant 0 : i32
    %c0_i32_1 = arith.constant 0 : i32
    return %c0_i32, %c0_i32_0 : i32, i32
  }
}

</mosaic_0001>

<bundles_post_ra>
// kernel: tpu_custom_call.1
= control target key start
LH: loop header
LB: loop body
LE: loop exit
PB: predicated region body
PF: predicated region fallthrough
CT: control target
= control target key end

     0   :  { %9 = vsyncpa [#allocation3], 0  ;;  %s3866_s0 = inlined_call_operand.hbm [shape: bf16[2,1024], index: 0, kind: input, shape index: {}]   ;;  %s3867_s1 = inlined_call_operand.hbm [shape: bf16[1856,512], index: 1, kind: input, shape index: {}]   ;;  %s3868_s2 = inlined_call_operand.hbm [shape: f32[10,512], index: 2, kind: input, shape index: {}]   ;;  %s3869_s3 = inlined_call_operand.vmem [shape: f32[2,1], index: 3, kind: input, shape index: {}]   ;;  %s3870_s4 = inlined_call_operand.hbm [shape: f32[2,2], index: 4, kind: output, shape index: {}]  }
   0x1   :  { %10 = vsyncpa [#allocation6], 0 }
   0x2   :  { %11 = vsyncpa [#allocation4], 0  ;;  %s3719_s15 = smov [#allocation5]   ;;  %s3625_s19 = scalar_lea.hbm %s3867_s1, 59392 }
   0x3   :  { %s27_s16 = sshll.u32 %s3719_s15, 4  ;;  %p3626_p0 = scmp.ne.s32.totalorder %s3867_s1, %s3625_s19  ;;  %s28_s16 = int_to_ptr.vmem [resolvable:$true] %s27_s16 }
   0x4   :  { %p3629_p1 = scmp.lt.u32.totalorder %s3625_s19, %s3867_s1 }
   0x6   :  { %p3631_p2 = pnand %p3629_p1, %p3626_p0 }
   0x8   :  { %3634 = shalt.err (!%p3631_p2)
}
   0x9   :  { %s3635_s24 = scalar_lea.vmem %s28_s16, 59392  ;;  %p3640_p4 = scmp.lt.s32.totalorder %s28_s16, %s28_s16 }
   0xa   :  { %p3636_p3 = scmp.ne.s32.totalorder %s28_s16, %s3635_s24  ;;  %p3641_p5 = scmp.lt.s32.totalorder %s3635_s24, %s3635_s24 }
   0xc   :  { %p3642_p6 = por %p3641_p5, %p3640_p4 }
   0xe   :  { %p3643_p7 = pnand %p3642_p6, %p3636_p3 }
  0x10   :  { %3646 = shalt.err (!%p3643_p7)
}
  0x11   :  { %s3720_s25 = smov 256   ;;  %s3721_s26 = smov 16  }
  0x12   :  { %33 = dma.hbm_to_vmem [thread:$0]  %s3867_s1, 59392, %s28_s16, [#allocation6], %s3720_s25, %s3720_s25, %s3721_s26  }
  0x13   :  { %s3722_s29 = smov [#allocation2]   ;;  %s3723_s5 = smov [#allocation7]  }
  0x14   :  { %s18_s30 = sshll.u32 %s3722_s29, 4  ;;  %s39_s6 = sshll.u32 %s3723_s5, 4  ;;  %s19_s30 = int_to_ptr.vmem [resolvable:$true] %s18_s30  ;;  %s40_s6 = int_to_ptr.vmem [resolvable:$true] %s39_s6 }
  0x15   :  { %s3647_s9 = scalar_lea.hbm %s3866_s0, 128 }
  0x16   :  { %p3648_p8 = scmp.ne.s32.totalorder %s3866_s0, %s3647_s9  ;;  %p3651_p9 = scmp.lt.u32.totalorder %s3647_s9, %s3866_s0 }
  0x18   :  { %p3653_p10 = pnand %p3651_p9, %p3648_p8 }
  0x1a   :  { %3656 = shalt.err (!%p3653_p10)
}
  0x1b   :  { %s3657_s1 = scalar_lea.vmem %s19_s30, 128  ;;  %p3662_p12 = scmp.lt.s32.totalorder %s19_s30, %s19_s30 }
  0x1c   :  { %p3658_p11 = scmp.ne.s32.totalorder %s19_s30, %s3657_s1  ;;  %p3663_p13 = scmp.lt.s32.totalorder %s3657_s1, %s3657_s1 }
  0x1e   :  { %p3664_p0 = por %p3663_p13, %p3662_p12 }
  0x20   :  { %p3665_p1 = pnand %p3664_p0, %p3658_p11 }
  0x22   :  { %3668 = shalt.err (!%p3665_p1)
}
  0x23   :  { %21 = dma.hbm_to_vmem [thread:$0]  %s3866_s0, 128, %s19_s30, [#allocation3]  }
  0x24   :  { %s3669_s18 = scalar_lea.hbm %s3868_s2, 1024 }
  0x25   :  { %p3670_p2 = scmp.ne.s32.totalorder %s3868_s2, %s3669_s18  ;;  %p3673_p3 = scmp.lt.u32.totalorder %s3669_s18, %s3868_s2 }
  0x27   :  { %p3675_p4 = pnand %p3673_p3, %p3670_p2 }
  0x29   :  { %3678 = shalt.err (!%p3675_p4)
}
  0x2a   :  { %s3679_s23 = scalar_lea.vmem %s40_s6, 1024  ;;  %p3684_p6 = scmp.lt.s32.totalorder %s40_s6, %s40_s6 }
  0x2b   :  { %p3680_p5 = scmp.ne.s32.totalorder %s40_s6, %s3679_s23  ;;  %p3685_p7 = scmp.lt.s32.totalorder %s3679_s23, %s3679_s23 }
  0x2d   :  { %p3686_p8 = por %p3685_p7, %p3684_p6 }
  0x2f   :  { %p3687_p9 = pnand %p3686_p8, %p3680_p5 }
  0x31   :  { %3690 = shalt.err (!%p3687_p9)
}
  0x32   :  { %s3724_s0 = smov 512   ;;  %s3725_s24 = smov 32  }
  0x33   :  { %45 = dma.hbm_to_vmem [thread:$0]  %s3868_s2, 1024, %s40_s6, [#allocation6], %s3724_s0, %s3724_s0, %s3725_s24  }
  0x34   :  { %3713 = dma.done.wait [#allocation3], 128  }
  0x35   :  { %3714 = vsyncadd [#allocation3], 4294967168 }
  0x36   :  { %3715 = dma.done.wait [#allocation6], 60416  }
  0x37   :  { %3716 = vsyncadd [#allocation6], 4294906880  ;;  %v3188_v0 = vld [vmem:[#allocation5 + $0x4] ss:$16 sps:$4 sm:$0xff]   ;;  %v3190_v1 = vld [vmem:[#allocation5 + $0xc] ss:$16 sps:$4 sm:$0xff]   ;;  %v320_v38 = vlaneseq }
  0x38   :  { %1653 = vmatprep.subr.bf16.mxu0 %v3188_v0  ;;  %v3192_v2 = vld [vmem:[#allocation5] ss:$16 sps:$4 sm:$0xff]   ;;  %v3193_v3 = vld [vmem:[#allocation5 + $0x8] ss:$16 sps:$4 sm:$0xff]   ;;  %1817 = vmatprep.subr.bf16.mxu1 %v3190_v1  ;;  %v3194_v4 = vld [vmem:[#allocation5 + $0x24] ss:$16 sps:$4 sm:$0xff]  }
  0x39   :  { %1654 = vmatpush1.bf16.msra.mxu0 %v3192_v2  ;;  %1818 = vmatpush1.bf16.msra.mxu1 %v3193_v3  ;;  %v3196_v5 = vld [vmem:[#allocation5 + $0x2c] ss:$16 sps:$4 sm:$0xff]   ;;  %v3198_v6 = vld [vmem:[#allocation5 + $0x20] ss:$16 sps:$4 sm:$0xff]   ;;  %v3199_v7 = vld [vmem:[#allocation5 + $0x28] ss:$16 sps:$4 sm:$0xff]  }
  0x3a   :  { %1655 = vmatprep.subr.bf16.mxu0 %v3194_v4  ;;  %1819 = vmatprep.subr.bf16.mxu1 %v3196_v5  ;;  %v3200_v8 = vld [vmem:[#allocation5 + $0x44] ss:$16 sps:$4 sm:$0xff]   ;;  %v3202_v9 = vld [vmem:[#allocation5 + $0x4c] ss:$16 sps:$4 sm:$0xff]   ;;  %v3204_v10 = vld [vmem:[#allocation5 + $0x40] ss:$16 sps:$4 sm:$0xff]  }
  0x3b   :  { %v3205_v11 = vld [vmem:[#allocation5 + $0x48] ss:$16 sps:$4 sm:$0xff]   ;;  %v3206_v12 = vld [vmem:[#allocation5 + $0x64] ss:$16 sps:$4 sm:$0xff]   ;;  %v3208_v13 = vld [vmem:[#allocation5 + $0x6c] ss:$16 sps:$4 sm:$0xff]  }
  0x3c   :  { %v3210_v14 = vld [vmem:[#allocation5 + $0x60] ss:$16 sps:$4 sm:$0xff]   ;;  %v3211_v15 = vld [vmem:[#allocation5 + $0x68] ss:$16 sps:$4 sm:$0xff]   ;;  %v3212_v16 = vld [vmem:[#allocation5 + $0x84] ss:$16 sps:$4 sm:$0xff]  }
  0x3d   :  { %1656 = vmatpush1.bf16.msra.mxu0 %v3198_v6  ;;  %1820 = vmatpush1.bf16.msra.mxu1 %v3199_v7  ;;  %v3214_v17 = vld [vmem:[#allocation5 + $0x8c] ss:$16 sps:$4 sm:$0xff]   ;;  %v3216_v18 = vld [vmem:[#allocation5 + $0x80] ss:$16 sps:$4 sm:$0xff]   ;;  %v3217_v19 = vld [vmem:[#allocation5 + $0x88] ss:$16 sps:$4 sm:$0xff]  }
  0x3e   :  { %1657 = vmatprep.subr.bf16.mxu0 %v3200_v8  ;;  %1821 = vmatprep.subr.bf16.mxu1 %v3202_v9  ;;  %v3218_v20 = vld [vmem:[#allocation5 + $0xa4] ss:$16 sps:$4 sm:$0xff]   ;;  %v3220_v21 = vld [vmem:[#allocation5 + $0xac] ss:$16 sps:$4 sm:$0xff]   ;;  %v3222_v22 = vld [vmem:[#allocation5 + $0xa0] ss:$16 sps:$4 sm:$0xff]  }
  0x3f   :  { %v3223_v23 = vld [vmem:[#allocation5 + $0xa8] ss:$16 sps:$4 sm:$0xff]   ;;  %v3224_v24 = vld [vmem:[#allocation5 + $0xc4] ss:$16 sps:$4 sm:$0xff]   ;;  %v3226_v25 = vld [vmem:[#allocation5 + $0xcc] ss:$16 sps:$4 sm:$0xff]  }
  0x40   :  { %v3228_v26 = vld [vmem:[#allocation5 + $0xc0] ss:$16 sps:$4 sm:$0xff]   ;;  %v3229_v27 = vld [vmem:[#allocation5 + $0xc8] ss:$16 sps:$4 sm:$0xff]   ;;  %v3230_v28 = vld [vmem:[#allocation5 + $0xe4] ss:$16 sps:$4 sm:$0xff]  }
  0x41   :  { %1658 = vmatpush1.bf16.msra.mxu0 %v3204_v10  ;;  %1822 = vmatpush1.bf16.msra.mxu1 %v3205_v11  ;;  %v3232_v29 = vld [vmem:[#allocation5 + $0xec] ss:$16 sps:$4 sm:$0xff]   ;;  %v3234_v30 = vld [vmem:[#allocation5 + $0xe0] ss:$16 sps:$4 sm:$0xff]   ;;  %v3235_v31 = vld [vmem:[#allocation5 + $0xe8] ss:$16 sps:$4 sm:$0xff]  }
  0x42   :  { %1659 = vmatprep.subr.bf16.mxu0 %v3206_v12  ;;  %1823 = vmatprep.subr.bf16.mxu1 %v3208_v13  ;;  %v3236_v32 = vld [vmem:[#allocation5 + $0x104] ss:$16 sps:$4 sm:$0xff]   ;;  %v3238_v33 = vld [vmem:[#allocation5 + $0x10c] ss:$16 sps:$4 sm:$0xff]   ;;  %v3240_v34 = vld [vmem:[#allocation5 + $0x100] ss:$16 sps:$4 sm:$0xff]  }
  0x43   :  { %v3241_v35 = vld [vmem:[#allocation5 + $0x108] ss:$16 sps:$4 sm:$0xff]   ;;  %v3726_v36 = vmov 1966171168   ;;  %v3242_v39 = vld [vmem:[#allocation5 + $0x124] ss:$16 sps:$4 sm:$0xff]  }
  0x44   :  { %v318_v37 = vunpack.c.l.s4 %v3726_v36  ;;  %v3244_v40 = vld [vmem:[#allocation5 + $0x12c] ss:$16 sps:$4 sm:$0xff]   ;;  %v3246_v41 = vld [vmem:[#allocation5 + $0x120] ss:$16 sps:$4 sm:$0xff]   ;;  %v3792_v43 = vshrl.u32 %v320_v38, 7  ;;  %vm3728_vm4 = vmmov 0  }
  0x45   :  { %1660 = vmatpush1.bf16.msra.mxu0 %v3210_v14  ;;  %1824 = vmatpush1.bf16.msra.mxu1 %v3211_v15  ;;  %v3247_v44 = vld [vmem:[#allocation5 + $0x128] ss:$16 sps:$4 sm:$0xff]   ;;  %v3248_v45 = vld [vmem:[#allocation5 + $0x144] ss:$16 sps:$4 sm:$0xff]   ;;  %v3250_v46 = vld [vmem:[#allocation5 + $0x14c] ss:$16 sps:$4 sm:$0xff]  }
  0x46   :  { %1661 = vmatprep.subr.bf16.mxu0 %v3212_v16  ;;  %1825 = vmatprep.subr.bf16.mxu1 %v3214_v17  ;;  %v319_v42 = vunpack.c.0.s8 %v318_v37  ;;  %v3252_v47 = vld [vmem:[#allocation5 + $0x140] ss:$16 sps:$4 sm:$0xff]   ;;  %v3253_v48 = vld [vmem:[#allocation5 + $0x148] ss:$16 sps:$4 sm:$0xff]   ;;  %v3254_v50 = vld [vmem:[#allocation5 + $0x164] ss:$16 sps:$4 sm:$0xff]  }
  0x47   :  { %v3256_v51 = vld [vmem:[#allocation5 + $0x16c] ss:$16 sps:$4 sm:$0xff]   ;;  %v3258_v53 = vld [vmem:[#allocation5 + $0x160] ss:$16 sps:$4 sm:$0xff]   ;;  %v3259_v55 = vld [vmem:[#allocation5 + $0x168] ss:$16 sps:$4 sm:$0xff]  }
  0x48   :  { %v3795_v49 = vsub.s32 %v319_v42, %v3792_v43  ;;  %v58_v52 = vld [vmem:[#allocation2] sm:$0xff]  ;;  %v3260_v56 = vld [vmem:[#allocation5 + $0x184] ss:$16 sps:$4 sm:$0xff]   ;;  %v3264_v59 = vld [vmem:[#allocation5 + $0x180] ss:$16 sps:$4 sm:$0xff]   ;;  %vm2538_vm7 = vcmask 523264  }
  0x49   :  { %1662 = vmatpush1.bf16.msra.mxu0 %v3216_v18  ;;  %1826 = vmatpush1.bf16.msra.mxu1 %v3217_v19  ;;  %v3262_v57 = vld [vmem:[#allocation5 + $0x18c] ss:$16 sps:$4 sm:$0xff]   ;;  %v3265_v61 = vld [vmem:[#allocation5 + $0x188] ss:$16 sps:$4 sm:$0xff]   ;;  %v3266_v62 = vld [vmem:[#allocation5 + $0x1a4] ss:$16 sps:$4 sm:$0xff]   ;;  %v316_v9 = vcombine.high %v58_v52, %v58_v52 }
  0x4a   :  { %1663 = vmatprep.subr.bf16.mxu0 %v3218_v20  ;;  %1827 = vmatprep.subr.bf16.mxu1 %v3220_v21  ;;  %v323_v54 = vrot.slane %v58_v52, %v3795_v49  ;;  %v3268_v63 = vld [vmem:[#allocation5 + $0x1ac] ss:$16 sps:$4 sm:$0xff]   ;;  %v3270_v0 = vld [vmem:[#allocation5 + $0x1a0] ss:$16 sps:$4 sm:$0xff]   ;;  %v3271_v1 = vld [vmem:[#allocation5 + $0x1a8] ss:$16 sps:$4 sm:$0xff]  }
  0x4b   :  { %v3272_v2 = vld [vmem:[#allocation5 + $0x1c4] ss:$16 sps:$4 sm:$0xff]   ;;  %v3274_v3 = vld [vmem:[#allocation5 + $0x1cc] ss:$16 sps:$4 sm:$0xff]   ;;  %v3276_v4 = vld [vmem:[#allocation5 + $0x1c0] ss:$16 sps:$4 sm:$0xff]   ;;  %v330_v13 = vrot.slane %v316_v9, %v3795_v49 }
  0x4c   :  { %v331_v58 = vcombine.high %v323_v54, %v323_v54  ;;  %v3277_v5 = vld [vmem:[#allocation5 + $0x1c8] ss:$16 sps:$4 sm:$0xff]   ;;  %v3278_v6 = vld [vmem:[#allocation5 + $0x1e4] ss:$16 sps:$4 sm:$0xff]   ;;  %v3280_v7 = vld [vmem:[#allocation5 + $0x1ec] ss:$16 sps:$4 sm:$0xff]   ;;  %v3801_v15 = vrot.slane %v323_v54, %v3795_v49 }
  0x4d   :  { %1664 = vmatpush1.bf16.msra.mxu0 %v3222_v22  ;;  %1828 = vmatpush1.bf16.msra.mxu1 %v3223_v23  ;;  %v3282_v8 = vld [vmem:[#allocation5 + $0x1e0] ss:$16 sps:$4 sm:$0xff]   ;;  %v3283_v10 = vld [vmem:[#allocation5 + $0x1e8] ss:$16 sps:$4 sm:$0xff]   ;;  %v3286_v11 = vld [vmem:[#allocation5 + $0x204] ss:$16 sps:$4 sm:$0xff]   ;;  %v332_v16 = vcombine.high %v330_v13, %v330_v13  ;;  %v3807_v21 = vrot.slane %v330_v13, %v3795_v49 }
  0x4e   :  { %1665 = vmatprep.subr.bf16.mxu0 %v3224_v24  ;;  %1829 = vmatprep.subr.bf16.mxu1 %v3226_v25  ;;  %v353_v60 = vrot.slane %v331_v58, %v3795_v49  ;;  %v3289_v12 = vld [vmem:[#allocation5 + $0x20c] ss:$16 sps:$4 sm:$0xff]   ;;  %v3284_v14 = vld [vmem:[#allocation5 + $0x200] ss:$16 sps:$4 sm:$0xff]   ;;  %v3287_v17 = vld [vmem:[#allocation5 + $0x208] ss:$16 sps:$4 sm:$0xff]  }
  0x4f   :  { %v3292_v18 = vld [vmem:[#allocation5 + $0x224] ss:$16 sps:$4 sm:$0xff]   ;;  %v3295_v19 = vld [vmem:[#allocation5 + $0x22c] ss:$16 sps:$4 sm:$0xff]   ;;  %v3804_v20 = vrot.slane %v332_v16, %v3795_v49  ;;  %v3290_v23 = vld [vmem:[#allocation5 + $0x220] ss:$16 sps:$4 sm:$0xff]  }
  0x50   :  { %1685 = vmatprep.mubr.bf16.mxu0 %v353_v60  ;;  %1849 = vmatprep.mubr.bf16.mxu1 %v353_v60  ;;  %v363_v22 = vcombine.high %v353_v60, %v353_v60  ;;  %v3293_v24 = vld [vmem:[#allocation5 + $0x228] ss:$16 sps:$4 sm:$0xff]   ;;  %v3298_v25 = vld [vmem:[#allocation5 + $0x244] ss:$16 sps:$4 sm:$0xff]   ;;  %v3319_v38 = vld [vmem:[#allocation5 + $0x2ac] ss:$16 sps:$4 sm:$0xff]  }
  0x51   :  { %1666 = vmatpush1.bf16.msra.mxu0 %v3228_v26  ;;  %1830 = vmatpush1.bf16.msra.mxu1 %v3229_v27  ;;  %v3301_v26 = vld [vmem:[#allocation5 + $0x24c] ss:$16 sps:$4 sm:$0xff]   ;;  %v3296_v27 = vld [vmem:[#allocation5 + $0x240] ss:$16 sps:$4 sm:$0xff]   ;;  %v3311_v36 = vld [vmem:[#allocation5 + $0x288] ss:$16 sps:$4 sm:$0xff]  }
  0x52   :  { %1667 = vmatprep.subr.bf16.mxu0 %v3230_v28  ;;  %1831 = vmatprep.subr.bf16.mxu1 %v3232_v29  ;;  %v3299_v28 = vld [vmem:[#allocation5 + $0x248] ss:$16 sps:$4 sm:$0xff]   ;;  %v3304_v29 = vld [vmem:[#allocation5 + $0x264] ss:$16 sps:$4 sm:$0xff]   ;;  %v3325_v42 = vld [vmem:[#allocation5 + $0x2cc] ss:$16 sps:$4 sm:$0xff]  }
  0x53   :  { %v3316_v37 = vld [vmem:[#allocation5 + $0x2a4] ss:$16 sps:$4 sm:$0xff]   ;;  %v3329_v49 = vld [vmem:[#allocation5 + $0x2e8] ss:$16 sps:$4 sm:$0xff]   ;;  %v3332_v52 = vld [vmem:[#allocation5 + $0x300] ss:$16 sps:$4 sm:$0xff]  }
  0x54   :  { %v3340_v54 = vld [vmem:[#allocation5 + $0x324] ss:$16 sps:$4 sm:$0xff]   ;;  %v3344_v60 = vld [vmem:[#allocation5 + $0x340] ss:$16 sps:$4 sm:$0xff]   ;;  %v3365_v9 = vld [vmem:[#allocation5 + $0x3a8] ss:$16 sps:$4 sm:$0xff]  }
  0x55   :  { %1668 = vmatpush1.bf16.msra.mxu0 %v3234_v30  ;;  %1832 = vmatpush1.bf16.msra.mxu1 %v3235_v31  ;;  %v3307_v30 = vld [vmem:[#allocation5 + $0x26c] ss:$16 sps:$4 sm:$0xff]   ;;  %v3302_v31 = vld [vmem:[#allocation5 + $0x260] ss:$16 sps:$4 sm:$0xff]   ;;  %v3346_v58 = vld [vmem:[#allocation5 + $0x344] ss:$16 sps:$4 sm:$0xff]  }
  0x56   :  { %1669 = vmatprep.subr.bf16.mxu0 %v3236_v32  ;;  %1833 = vmatprep.subr.bf16.mxu1 %v3238_v33  ;;  %v3305_v32 = vld [vmem:[#allocation5 + $0x268] ss:$16 sps:$4 sm:$0xff]   ;;  %v3310_v33 = vld [vmem:[#allocation5 + $0x284] ss:$16 sps:$4 sm:$0xff]   ;;  %v3379_v16 = vld [vmem:[#allocation5 + $0x3ec] ss:$16 sps:$4 sm:$0xff]  }
  0x57   :  { %v3371_v13 = vld [vmem:[#allocation5 + $0x3c8] ss:$16 sps:$4 sm:$0xff]   ;;  %vm2705_vm9 = vcmask 9216  }
  0x59   :  { %1670 = vmatpush1.bf16.msra.mxu0 %v3240_v34  ;;  %1834 = vmatpush1.bf16.msra.mxu1 %v3241_v35  ;;  %v3313_v34 = vld [vmem:[#allocation5 + $0x28c] ss:$16 sps:$4 sm:$0xff]   ;;  %v3308_v35 = vld [vmem:[#allocation5 + $0x280] ss:$16 sps:$4 sm:$0xff]  }
  0x5a   :  { %1671 = vmatprep.subr.bf16.mxu0 %v3242_v39  ;;  %1835 = vmatprep.subr.bf16.mxu1 %v3244_v40  ;;  %v3314_v39 = vld [vmem:[#allocation5 + $0x2a0] ss:$16 sps:$4 sm:$0xff]   ;;  %v3317_v40 = vld [vmem:[#allocation5 + $0x2a8] ss:$16 sps:$4 sm:$0xff]  }
  0x5d   :  { %1672 = vmatpush1.bf16.msra.mxu0 %v3246_v41  ;;  %1836 = vmatpush1.bf16.msra.mxu1 %v3247_v44  ;;  %v3322_v41 = vld [vmem:[#allocation5 + $0x2c4] ss:$16 sps:$4 sm:$0xff]   ;;  %v3320_v44 = vld [vmem:[#allocation5 + $0x2c0] ss:$16 sps:$4 sm:$0xff]  }
  0x5e   :  { %1673 = vmatprep.subr.bf16.mxu0 %v3248_v45  ;;  %1837 = vmatprep.subr.bf16.mxu1 %v3250_v46  ;;  %v3323_v45 = vld [vmem:[#allocation5 + $0x2c8] ss:$16 sps:$4 sm:$0xff]   ;;  %v3328_v46 = vld [vmem:[#allocation5 + $0x2e4] ss:$16 sps:$4 sm:$0xff]  }
  0x61   :  { %1674 = vmatpush1.bf16.msra.mxu0 %v3252_v47  ;;  %1838 = vmatpush1.bf16.msra.mxu1 %v3253_v48  ;;  %v3331_v47 = vld [vmem:[#allocation5 + $0x2ec] ss:$16 sps:$4 sm:$0xff]   ;;  %v3326_v48 = vld [vmem:[#allocation5 + $0x2e0] ss:$16 sps:$4 sm:$0xff]  }
  0x62   :  { %1675 = vmatprep.subr.bf16.mxu0 %v3254_v50  ;;  %1839 = vmatprep.subr.bf16.mxu1 %v3256_v51  ;;  %v3334_v50 = vld [vmem:[#allocation5 + $0x304] ss:$16 sps:$4 sm:$0xff]   ;;  %v3337_v51 = vld [vmem:[#allocation5 + $0x30c] ss:$16 sps:$4 sm:$0xff]  }
  0x65   :  { %1676 = vmatpush1.bf16.msra.mxu0 %v3258_v53  ;;  %1840 = vmatpush1.bf16.msra.mxu1 %v3259_v55  ;;  %v3335_v53 = vld [vmem:[#allocation5 + $0x308] ss:$16 sps:$4 sm:$0xff]   ;;  %v3343_v55 = vld [vmem:[#allocation5 + $0x32c] ss:$16 sps:$4 sm:$0xff]  }
  0x66   :  { %1677 = vmatprep.subr.bf16.mxu0 %v3260_v56  ;;  %1841 = vmatprep.subr.bf16.mxu1 %v3262_v57  ;;  %v3338_v56 = vld [vmem:[#allocation5 + $0x320] ss:$16 sps:$4 sm:$0xff]   ;;  %v3341_v57 = vld [vmem:[#allocation5 + $0x328] ss:$16 sps:$4 sm:$0xff]  }
  0x69   :  { %1678 = vmatpush1.bf16.msra.mxu0 %v3264_v59  ;;  %1842 = vmatpush1.bf16.msra.mxu1 %v3265_v61  ;;  %v3349_v59 = vld [vmem:[#allocation5 + $0x34c] ss:$16 sps:$4 sm:$0xff]   ;;  %v3347_v61 = vld [vmem:[#allocation5 + $0x348] ss:$16 sps:$4 sm:$0xff]  }
  0x6a   :  { %1679 = vmatprep.subr.bf16.mxu0 %v3266_v62  ;;  %1843 = vmatprep.subr.bf16.mxu1 %v3268_v63  ;;  %v3352_v62 = vld [vmem:[#allocation5 + $0x364] ss:$16 sps:$4 sm:$0xff]   ;;  %v3355_v63 = vld [vmem:[#allocation5 + $0x36c] ss:$16 sps:$4 sm:$0xff]  }
  0x6d   :  { %1680 = vmatpush1.bf16.msra.mxu0 %v3270_v0  ;;  %1844 = vmatpush1.bf16.msra.mxu1 %v3271_v1  ;;  %v3350_v0 = vld [vmem:[#allocation5 + $0x360] ss:$16 sps:$4 sm:$0xff]   ;;  %v3353_v1 = vld [vmem:[#allocation5 + $0x368] ss:$16 sps:$4 sm:$0xff]  }
  0x6e   :  { %1681 = vmatprep.subr.bf16.mxu0 %v3272_v2  ;;  %1845 = vmatprep.subr.bf16.mxu1 %v3274_v3  ;;  %v3358_v2 = vld [vmem:[#allocation5 + $0x384] ss:$16 sps:$4 sm:$0xff]   ;;  %v3361_v3 = vld [vmem:[#allocation5 + $0x38c] ss:$16 sps:$4 sm:$0xff]  }
  0x71   :  { %1682 = vmatpush1.bf16.msra.mxu0 %v3276_v4  ;;  %1846 = vmatpush1.bf16.msra.mxu1 %v3277_v5  ;;  %v3356_v4 = vld [vmem:[#allocation5 + $0x380] ss:$16 sps:$4 sm:$0xff]   ;;  %v3359_v5 = vld [vmem:[#allocation5 + $0x388] ss:$16 sps:$4 sm:$0xff]  }
  0x72   :  { %1683 = vmatprep.subr.bf16.mxu0 %v3278_v6  ;;  %1847 = vmatprep.subr.bf16.mxu1 %v3280_v7  ;;  %v3364_v6 = vld [vmem:[#allocation5 + $0x3a4] ss:$16 sps:$4 sm:$0xff]   ;;  %v3367_v7 = vld [vmem:[#allocation5 + $0x3ac] ss:$16 sps:$4 sm:$0xff]  }
  0x75   :  { %1684 = vmatpush1.bf16.msra.mxu0 %v3282_v8  ;;  %1848 = vmatpush1.bf16.msra.mxu1 %v3283_v10  ;;  %v3362_v8 = vld [vmem:[#allocation5 + $0x3a0] ss:$16 sps:$4 sm:$0xff]   ;;  %v3370_v10 = vld [vmem:[#allocation5 + $0x3c4] ss:$16 sps:$4 sm:$0xff]  }
  0x76   :  { %1694 = vmatprep.subr.bf16.mxu0 %v3286_v11  ;;  %1858 = vmatprep.subr.bf16.mxu1 %v3289_v12  ;;  %v3373_v11 = vld [vmem:[#allocation5 + $0x3cc] ss:$16 sps:$4 sm:$0xff]   ;;  %v3368_v12 = vld [vmem:[#allocation5 + $0x3c0] ss:$16 sps:$4 sm:$0xff]  }
  0x78   :  { %1686 = vmatmul.mubr.bf16.vlgmr.msra.gmra.mrb[0].mxu0 %v3801_v15  ;;  %1850 = vmatmul.mubr.bf16.vlgmr.msra.gmra.mrb[0].mxu1 %v3801_v15 }
  0x79   :  { %1695 = vmatpush1.bf16.msra.mxu0 %v3284_v14  ;;  %1859 = vmatpush1.bf16.msra.mxu1 %v3287_v17  ;;  %v3376_v14 = vld [vmem:[#allocation5 + $0x3e4] ss:$16 sps:$4 sm:$0xff]   ;;  %v3374_v17 = vld [vmem:[#allocation5 + $0x3e0] ss:$16 sps:$4 sm:$0xff]  }
  0x7a   :  { %1696 = vmatprep.subr.bf16.mxu0 %v3292_v18  ;;  %1860 = vmatprep.subr.bf16.mxu1 %v3295_v19  ;;  %v3377_v18 = vld [vmem:[#allocation5 + $0x3e8] ss:$16 sps:$4 sm:$0xff]   ;;  %v3382_v19 = vld [vmem:[#allocation5 + $0x404] ss:$16 sps:$4 sm:$0xff]  }
  0x7b   :  { %1726 = vmatprep.mubr.bf16.mxu0 %v363_v22  ;;  %1890 = vmatprep.mubr.bf16.mxu1 %v363_v22  ;;  %v3385_v22 = vld [vmem:[#allocation5 + $0x40c] ss:$16 sps:$4 sm:$0xff]  }
  0x7d   :  { %1697 = vmatpush1.bf16.msra.mxu0 %v3290_v23  ;;  %1861 = vmatpush1.bf16.msra.mxu1 %v3293_v24  ;;  %v3380_v23 = vld [vmem:[#allocation5 + $0x400] ss:$16 sps:$4 sm:$0xff]   ;;  %v361_v24 = vcombine.high %v3801_v15, %v3801_v15 }
  0x7e   :  { %1698 = vmatprep.subr.bf16.mxu0 %v3298_v25  ;;  %1862 = vmatprep.subr.bf16.mxu1 %v3301_v26  ;;  %v3383_v25 = vld [vmem:[#allocation5 + $0x408] ss:$16 sps:$4 sm:$0xff]   ;;  %v3388_v26 = vld [vmem:[#allocation5 + $0x424] ss:$16 sps:$4 sm:$0xff]   ;;  %v3392_v15 = vld [vmem:[#allocation5 + $0x440] ss:$16 sps:$4 sm:$0xff]  }
  0x81   :  { %1699 = vmatpush1.bf16.msra.mxu0 %v3296_v27  ;;  %1863 = vmatpush1.bf16.msra.mxu1 %v3299_v28  ;;  %v3391_v27 = vld [vmem:[#allocation5 + $0x42c] ss:$16 sps:$4 sm:$0xff]   ;;  %v3386_v28 = vld [vmem:[#allocation5 + $0x420] ss:$16 sps:$4 sm:$0xff]  }
  0x82   :  { %1700 = vmatprep.subr.bf16.mxu0 %v3304_v29  ;;  %1864 = vmatprep.subr.bf16.mxu1 %v3307_v30  ;;  %v3389_v29 = vld [vmem:[#allocation5 + $0x428] ss:$16 sps:$4 sm:$0xff]   ;;  %v3394_v30 = vld [vmem:[#allocation5 + $0x444] ss:$16 sps:$4 sm:$0xff]  }
  0x85   :  { %1701 = vmatpush1.bf16.msra.mxu0 %v3302_v31  ;;  %1865 = vmatpush1.bf16.msra.mxu1 %v3305_v32  ;;  %v3397_v31 = vld [vmem:[#allocation5 + $0x44c] ss:$16 sps:$4 sm:$0xff]   ;;  %v3395_v32 = vld [vmem:[#allocation5 + $0x448] ss:$16 sps:$4 sm:$0xff]  }
  0x86   :  { %1702 = vmatprep.subr.bf16.mxu0 %v3310_v33  ;;  %1866 = vmatprep.subr.bf16.mxu1 %v3313_v34  ;;  %v3400_v33 = vld [vmem:[#allocation5 + $0x464] ss:$16 sps:$4 sm:$0xff]   ;;  %v3403_v34 = vld [vmem:[#allocation5 + $0x46c] ss:$16 sps:$4 sm:$0xff]  }
  0x89   :  { %1703 = vmatpush1.bf16.msra.mxu0 %v3308_v35  ;;  %1867 = vmatpush1.bf16.msra.mxu1 %v3311_v36  ;;  %v3398_v35 = vld [vmem:[#allocation5 + $0x460] ss:$16 sps:$4 sm:$0xff]   ;;  %v3401_v36 = vld [vmem:[#allocation5 + $0x468] ss:$16 sps:$4 sm:$0xff]  }
  0x8a   :  { %1704 = vmatprep.subr.bf16.mxu0 %v3316_v37  ;;  %1868 = vmatprep.subr.bf16.mxu1 %v3319_v38  ;;  %v3406_v37 = vld [vmem:[#allocation5 + $0x484] ss:$16 sps:$4 sm:$0xff]   ;;  %v3409_v38 = vld [vmem:[#allocation5 + $0x48c] ss:$16 sps:$4 sm:$0xff]  }
  0x8d   :  { %1705 = vmatpush1.bf16.msra.mxu0 %v3314_v39  ;;  %1869 = vmatpush1.bf16.msra.mxu1 %v3317_v40  ;;  %v3404_v39 = vld [vmem:[#allocation5 + $0x480] ss:$16 sps:$4 sm:$0xff]   ;;  %v3407_v40 = vld [vmem:[#allocation5 + $0x488] ss:$16 sps:$4 sm:$0xff]  }
  0x8e   :  { %1706 = vmatprep.subr.bf16.mxu0 %v3322_v41  ;;  %1870 = vmatprep.subr.bf16.mxu1 %v3325_v42  ;;  %v3412_v41 = vld [vmem:[#allocation5 + $0x4a4] ss:$16 sps:$4 sm:$0xff]   ;;  %v3415_v42 = vld [vmem:[#allocation5 + $0x4ac] ss:$16 sps:$4 sm:$0xff]  }
  0x91   :  { %1707 = vmatpush1.bf16.msra.mxu0 %v3320_v44  ;;  %1871 = vmatpush1.bf16.msra.mxu1 %v3323_v45  ;;  %v3410_v44 = vld [vmem:[#allocation5 + $0x4a0] ss:$16 sps:$4 sm:$0xff]   ;;  %v3413_v45 = vld [vmem:[#allocation5 + $0x4a8] ss:$16 sps:$4 sm:$0xff]  }
  0x92   :  { %1708 = vmatprep.subr.bf16.mxu0 %v3328_v46  ;;  %1872 = vmatprep.subr.bf16.mxu1 %v3331_v47  ;;  %v3418_v46 = vld [vmem:[#allocation5 + $0x4c4] ss:$16 sps:$4 sm:$0xff]   ;;  %v3421_v47 = vld [vmem:[#allocation5 + $0x4cc] ss:$16 sps:$4 sm:$0xff]  }
  0x95   :  { %1709 = vmatpush1.bf16.msra.mxu0 %v3326_v48  ;;  %1873 = vmatpush1.bf16.msra.mxu1 %v3329_v49  ;;  %v3416_v48 = vld [vmem:[#allocation5 + $0x4c0] ss:$16 sps:$4 sm:$0xff]   ;;  %v3419_v49 = vld [vmem:[#allocation5 + $0x4c8] ss:$16 sps:$4 sm:$0xff]  }
  0x96   :  { %1710 = vmatprep.subr.bf16.mxu0 %v3334_v50  ;;  %1874 = vmatprep.subr.bf16.mxu1 %v3337_v51  ;;  %v3424_v50 = vld [vmem:[#allocation5 + $0x4e4] ss:$16 sps:$4 sm:$0xff]   ;;  %v3427_v51 = vld [vmem:[#allocation5 + $0x4ec] ss:$16 sps:$4 sm:$0xff]  }
  0x99   :  { %1711 = vmatpush1.bf16.msra.mxu0 %v3332_v52  ;;  %1875 = vmatpush1.bf16.msra.mxu1 %v3335_v53  ;;  %v3422_v52 = vld [vmem:[#allocation5 + $0x4e0] ss:$16 sps:$4 sm:$0xff]   ;;  %v3425_v53 = vld [vmem:[#allocation5 + $0x4e8] ss:$16 sps:$4 sm:$0xff]  }
  0x9a   :  { %1712 = vmatprep.subr.bf16.mxu0 %v3340_v54  ;;  %1876 = vmatprep.subr.bf16.mxu1 %v3343_v55  ;;  %v3430_v54 = vld [vmem:[#allocation5 + $0x504] ss:$16 sps:$4 sm:$0xff]   ;;  %v3433_v55 = vld [vmem:[#allocation5 + $0x50c] ss:$16 sps:$4 sm:$0xff]  }
  0x9d   :  { %1713 = vmatpush1.bf16.msra.mxu0 %v3338_v56  ;;  %1877 = vmatpush1.bf16.msra.mxu1 %v3341_v57  ;;  %v3428_v56 = vld [vmem:[#allocation5 + $0x500] ss:$16 sps:$4 sm:$0xff]   ;;  %v3431_v57 = vld [vmem:[#allocation5 + $0x508] ss:$16 sps:$4 sm:$0xff]  }
  0x9e   :  { %1714 = vmatprep.subr.bf16.mxu0 %v3346_v58  ;;  %1878 = vmatprep.subr.bf16.mxu1 %v3349_v59  ;;  %v3436_v58 = vld [vmem:[#allocation5 + $0x524] ss:$16 sps:$4 sm:$0xff]   ;;  %v3439_v59 = vld [vmem:[#allocation5 + $0x52c] ss:$16 sps:$4 sm:$0xff]  }
  0xa1   :  { %1715 = vmatpush1.bf16.msra.mxu0 %v3344_v60  ;;  %1879 = vmatpush1.bf16.msra.mxu1 %v3347_v61  ;;  %v3434_v60 = vld [vmem:[#allocation5 + $0x520] ss:$16 sps:$4 sm:$0xff]   ;;  %v3437_v61 = vld [vmem:[#allocation5 + $0x528] ss:$16 sps:$4 sm:$0xff]  }
  0xa2   :  { %1716 = vmatprep.subr.bf16.mxu0 %v3352_v62  ;;  %1880 = vmatprep.subr.bf16.mxu1 %v3355_v63  ;;  %v3442_v62 = vld [vmem:[#allocation5 + $0x544] ss:$16 sps:$4 sm:$0xff]   ;;  %v3445_v63 = vld [vmem:[#allocation5 + $0x54c] ss:$16 sps:$4 sm:$0xff]  }
  0xa5   :  { %1717 = vmatpush1.bf16.msra.mxu0 %v3350_v0  ;;  %1881 = vmatpush1.bf16.msra.mxu1 %v3353_v1  ;;  %v3440_v0 = vld [vmem:[#allocation5 + $0x540] ss:$16 sps:$4 sm:$0xff]   ;;  %v3443_v1 = vld [vmem:[#allocation5 + $0x548] ss:$16 sps:$4 sm:$0xff]  }
  0xa6   :  { %1718 = vmatprep.subr.bf16.mxu0 %v3358_v2  ;;  %1882 = vmatprep.subr.bf16.mxu1 %v3361_v3  ;;  %v3448_v2 = vld [vmem:[#allocation5 + $0x564] ss:$16 sps:$4 sm:$0xff]   ;;  %v3451_v3 = vld [vmem:[#allocation5 + $0x56c] ss:$16 sps:$4 sm:$0xff]  }
  0xa9   :  { %1719 = vmatpush1.bf16.msra.mxu0 %v3356_v4  ;;  %1883 = vmatpush1.bf16.msra.mxu1 %v3359_v5  ;;  %v3446_v4 = vld [vmem:[#allocation5 + $0x560] ss:$16 sps:$4 sm:$0xff]   ;;  %v3449_v5 = vld [vmem:[#allocation5 + $0x568] ss:$16 sps:$4 sm:$0xff]  }
  0xaa   :  { %1720 = vmatprep.subr.bf16.mxu0 %v3364_v6  ;;  %1884 = vmatprep.subr.bf16.mxu1 %v3367_v7  ;;  %v3454_v6 = vld [vmem:[#allocation5 + $0x584] ss:$16 sps:$4 sm:$0xff]   ;;  %v3457_v7 = vld [vmem:[#allocation5 + $0x58c] ss:$16 sps:$4 sm:$0xff]  }
  0xad   :  { %1721 = vmatpush1.bf16.msra.mxu0 %v3362_v8  ;;  %1885 = vmatpush1.bf16.msra.mxu1 %v3365_v9  ;;  %v3452_v8 = vld [vmem:[#allocation5 + $0x580] ss:$16 sps:$4 sm:$0xff]   ;;  %v3455_v9 = vld [vmem:[#allocation5 + $0x588] ss:$16 sps:$4 sm:$0xff]  }
  0xae   :  { %1722 = vmatprep.subr.bf16.mxu0 %v3370_v10  ;;  %1886 = vmatprep.subr.bf16.mxu1 %v3373_v11  ;;  %v3460_v10 = vld [vmem:[#allocation5 + $0x5a4] ss:$16 sps:$4 sm:$0xff]   ;;  %v3463_v11 = vld [vmem:[#allocation5 + $0x5ac] ss:$16 sps:$4 sm:$0xff]  }
  0xb1   :  { %1723 = vmatpush1.bf16.msra.mxu0 %v3368_v12  ;;  %1887 = vmatpush1.bf16.msra.mxu1 %v3371_v13  ;;  %v3458_v12 = vld [vmem:[#allocation5 + $0x5a0] ss:$16 sps:$4 sm:$0xff]   ;;  %v3461_v13 = vld [vmem:[#allocation5 + $0x5a8] ss:$16 sps:$4 sm:$0xff]  }
  0xb2   :  { %1724 = vmatprep.subr.bf16.mxu0 %v3376_v14  ;;  %1888 = vmatprep.subr.bf16.mxu1 %v3379_v16  ;;  %v3466_v14 = vld [vmem:[#allocation5 + $0x5c4] ss:$16 sps:$4 sm:$0xff]   ;;  %v3469_v16 = vld [vmem:[#allocation5 + $0x5cc] ss:$16 sps:$4 sm:$0xff]  }
  0xb5   :  { %1725 = vmatpush1.bf16.msra.mxu0 %v3374_v17  ;;  %1889 = vmatpush1.bf16.msra.mxu1 %v3377_v18  ;;  %v3464_v17 = vld [vmem:[#allocation5 + $0x5c0] ss:$16 sps:$4 sm:$0xff]   ;;  %v3467_v18 = vld [vmem:[#allocation5 + $0x5c8] ss:$16 sps:$4 sm:$0xff]  }
  0xb6   :  { %1735 = vmatprep.subr.bf16.mxu0 %v3382_v19  ;;  %1899 = vmatprep.subr.bf16.mxu1 %v3385_v22  ;;  %v3472_v19 = vld [vmem:[#allocation5 + $0x5e4] ss:$16 sps:$4 sm:$0xff]   ;;  %v3475_v22 = vld [vmem:[#allocation5 + $0x5ec] ss:$16 sps:$4 sm:$0xff]  }
  0xb8   :  { %1727 = vmatmul.mubr.bf16.vlgmr.msra.gmra.mrb[0].mxu0 %v361_v24  ;;  %1891 = vmatmul.mubr.bf16.vlgmr.msra.gmra.mrb[0].mxu1 %v361_v24  ;;  %v3473_v24 = vld [vmem:[#allocation5 + $0x5e8] ss:$16 sps:$4 sm:$0xff]  }
  0xb9   :  { %1736 = vmatpush1.bf16.msra.mxu0 %v3380_v23  ;;  %1900 = vmatpush1.bf16.msra.mxu1 %v3383_v25  ;;  %v3470_v23 = vld [vmem:[#allocation5 + $0x5e0] ss:$16 sps:$4 sm:$0xff]   ;;  %v3479_v25 = vld [vmem:[#allocation5 + $0x604] ss:$16 sps:$4 sm:$0xff]  }
  0xba   :  { %1737 = vmatprep.subr.bf16.mxu0 %v3388_v26  ;;  %1901 = vmatprep.subr.bf16.mxu1 %v3391_v27  ;;  %v3482_v26 = vld [vmem:[#allocation5 + $0x60c] ss:$16 sps:$4 sm:$0xff]   ;;  %v3477_v27 = vld [vmem:[#allocation5 + $0x600] ss:$16 sps:$4 sm:$0xff]  }
  0xbb   :  { %1767 = vmatprep.mubr.bf16.mxu0 %v3804_v20  ;;  %1931 = vmatprep.mubr.bf16.mxu1 %v3804_v20 }
  0xbd   :  { %1738 = vmatpush1.bf16.msra.mxu0 %v3386_v28  ;;  %1902 = vmatpush1.bf16.msra.mxu1 %v3389_v29  ;;  %v3480_v28 = vld [vmem:[#allocation5 + $0x608] ss:$16 sps:$4 sm:$0xff]   ;;  %v3485_v29 = vld [vmem:[#allocation5 + $0x624] ss:$16 sps:$4 sm:$0xff]  }
  0xbe   :  { %1739 = vmatprep.subr.bf16.mxu0 %v3394_v30  ;;  %1903 = vmatprep.subr.bf16.mxu1 %v3397_v31  ;;  %v3488_v30 = vld [vmem:[#allocation5 + $0x62c] ss:$16 sps:$4 sm:$0xff]   ;;  %v3483_v31 = vld [vmem:[#allocation5 + $0x620] ss:$16 sps:$4 sm:$0xff]  }
  0xc1   :  { %1740 = vmatpush1.bf16.msra.mxu0 %v3392_v15  ;;  %1904 = vmatpush1.bf16.msra.mxu1 %v3395_v32  ;;  %v3486_v15 = vld [vmem:[#allocation5 + $0x628] ss:$16 sps:$4 sm:$0xff]   ;;  %v364_v32 = vcombine.high %v3804_v20, %v3804_v20  ;;  %v3495_v20 = vld [vmem:[#allocation5 + $0x660] ss:$16 sps:$4 sm:$0xff]  }
  0xc2   :  { %1741 = vmatprep.subr.bf16.mxu0 %v3400_v33  ;;  %1905 = vmatprep.subr.bf16.mxu1 %v3403_v34  ;;  %v3491_v33 = vld [vmem:[#allocation5 + $0x644] ss:$16 sps:$4 sm:$0xff]   ;;  %v3494_v34 = vld [vmem:[#allocation5 + $0x64c] ss:$16 sps:$4 sm:$0xff]  }
  0xc5   :  { %1742 = vmatpush1.bf16.msra.mxu0 %v3398_v35  ;;  %1906 = vmatpush1.bf16.msra.mxu1 %v3401_v36  ;;  %v3489_v35 = vld [vmem:[#allocation5 + $0x640] ss:$16 sps:$4 sm:$0xff]   ;;  %v3492_v36 = vld [vmem:[#allocation5 + $0x648] ss:$16 sps:$4 sm:$0xff]  }
  0xc6   :  { %1743 = vmatprep.subr.bf16.mxu0 %v3406_v37  ;;  %1907 = vmatprep.subr.bf16.mxu1 %v3409_v38  ;;  %v3497_v37 = vld [vmem:[#allocation5 + $0x664] ss:$16 sps:$4 sm:$0xff]   ;;  %v3500_v38 = vld [vmem:[#allocation5 + $0x66c] ss:$16 sps:$4 sm:$0xff]  }
  0xc9   :  { %1744 = vmatpush1.bf16.msra.mxu0 %v3404_v39  ;;  %1908 = vmatpush1.bf16.msra.mxu1 %v3407_v40  ;;  %v3498_v39 = vld [vmem:[#allocation5 + $0x668] ss:$16 sps:$4 sm:$0xff]   ;;  %v3503_v40 = vld [vmem:[#allocation5 + $0x684] ss:$16 sps:$4 sm:$0xff]  }
  0xca   :  { %1745 = vmatprep.subr.bf16.mxu0 %v3412_v41  ;;  %1909 = vmatprep.subr.bf16.mxu1 %v3415_v42  ;;  %v3506_v41 = vld [vmem:[#allocation5 + $0x68c] ss:$16 sps:$4 sm:$0xff]   ;;  %v3501_v42 = vld [vmem:[#allocation5 + $0x680] ss:$16 sps:$4 sm:$0xff]  }
  0xcd   :  { %1746 = vmatpush1.bf16.msra.mxu0 %v3410_v44  ;;  %1910 = vmatpush1.bf16.msra.mxu1 %v3413_v45  ;;  %v3504_v44 = vld [vmem:[#allocation5 + $0x688] ss:$16 sps:$4 sm:$0xff]   ;;  %v3509_v45 = vld [vmem:[#allocation5 + $0x6a4] ss:$16 sps:$4 sm:$0xff]  }
  0xce   :  { %1747 = vmatprep.subr.bf16.mxu0 %v3418_v46  ;;  %1911 = vmatprep.subr.bf16.mxu1 %v3421_v47  ;;  %v3512_v46 = vld [vmem:[#allocation5 + $0x6ac] ss:$16 sps:$4 sm:$0xff]   ;;  %v3507_v47 = vld [vmem:[#allocation5 + $0x6a0] ss:$16 sps:$4 sm:$0xff]  }
  0xd1   :  { %1748 = vmatpush1.bf16.msra.mxu0 %v3416_v48  ;;  %1912 = vmatpush1.bf16.msra.mxu1 %v3419_v49  ;;  %v3510_v48 = vld [vmem:[#allocation5 + $0x6a8] ss:$16 sps:$4 sm:$0xff]   ;;  %v3515_v49 = vld [vmem:[#allocation5 + $0x6c4] ss:$16 sps:$4 sm:$0xff]  }
  0xd2   :  { %1749 = vmatprep.subr.bf16.mxu0 %v3424_v50  ;;  %1913 = vmatprep.subr.bf16.mxu1 %v3427_v51  ;;  %v3518_v50 = vld [vmem:[#allocation5 + $0x6cc] ss:$16 sps:$4 sm:$0xff]   ;;  %v3513_v51 = vld [vmem:[#allocation5 + $0x6c0] ss:$16 sps:$4 sm:$0xff]  }
  0xd5   :  { %1750 = vmatpush1.bf16.msra.mxu0 %v3422_v52  ;;  %1914 = vmatpush1.bf16.msra.mxu1 %v3425_v53  ;;  %v3516_v52 = vld [vmem:[#allocation5 + $0x6c8] ss:$16 sps:$4 sm:$0xff]   ;;  %v3521_v53 = vld [vmem:[#allocation5 + $0x6e4] ss:$16 sps:$4 sm:$0xff]  }
  0xd6   :  { %1751 = vmatprep.subr.bf16.mxu0 %v3430_v54  ;;  %1915 = vmatprep.subr.bf16.mxu1 %v3433_v55  ;;  %v3524_v54 = vld [vmem:[#allocation5 + $0x6ec] ss:$16 sps:$4 sm:$0xff]   ;;  %v3519_v55 = vld [vmem:[#allocation5 + $0x6e0] ss:$16 sps:$4 sm:$0xff]  }
  0xd9   :  { %1752 = vmatpush1.bf16.msra.mxu0 %v3428_v56  ;;  %1916 = vmatpush1.bf16.msra.mxu1 %v3431_v57  ;;  %v3522_v56 = vld [vmem:[#allocation5 + $0x6e8] ss:$16 sps:$4 sm:$0xff]   ;;  %v3527_v57 = vld [vmem:[#allocation5 + $0x704] ss:$16 sps:$4 sm:$0xff]  }
  0xda   :  { %1753 = vmatprep.subr.bf16.mxu0 %v3436_v58  ;;  %1917 = vmatprep.subr.bf16.mxu1 %v3439_v59  ;;  %v3530_v58 = vld [vmem:[#allocation5 + $0x70c] ss:$16 sps:$4 sm:$0xff]   ;;  %v3525_v59 = vld [vmem:[#allocation5 + $0x700] ss:$16 sps:$4 sm:$0xff]  }
  0xdd   :  { %1754 = vmatpush1.bf16.msra.mxu0 %v3434_v60  ;;  %1918 = vmatpush1.bf16.msra.mxu1 %v3437_v61  ;;  %v3528_v60 = vld [vmem:[#allocation5 + $0x708] ss:$16 sps:$4 sm:$0xff]   ;;  %v3533_v61 = vld [vmem:[#allocation5 + $0x724] ss:$16 sps:$4 sm:$0xff]  }
  0xde   :  { %1755 = vmatprep.subr.bf16.mxu0 %v3442_v62  ;;  %1919 = vmatprep.subr.bf16.mxu1 %v3445_v63  ;;  %v3536_v62 = vld [vmem:[#allocation5 + $0x72c] ss:$16 sps:$4 sm:$0xff]   ;;  %v3531_v63 = vld [vmem:[#allocation5 + $0x720] ss:$16 sps:$4 sm:$0xff]  }
  0xe1   :  { %1756 = vmatpush1.bf16.msra.mxu0 %v3440_v0  ;;  %1920 = vmatpush1.bf16.msra.mxu1 %v3443_v1  ;;  %v3534_v0 = vld [vmem:[#allocation5 + $0x728] ss:$16 sps:$4 sm:$0xff]   ;;  %v3539_v1 = vld [vmem:[#allocation5 + $0x744] ss:$16 sps:$4 sm:$0xff]  }
  0xe2   :  { %1757 = vmatprep.subr.bf16.mxu0 %v3448_v2  ;;  %1921 = vmatprep.subr.bf16.mxu1 %v3451_v3  ;;  %v3542_v2 = vld [vmem:[#allocation5 + $0x74c] ss:$16 sps:$4 sm:$0xff]   ;;  %v3537_v3 = vld [vmem:[#allocation5 + $0x740] ss:$16 sps:$4 sm:$0xff]  }
  0xe5   :  { %1758 = vmatpush1.bf16.msra.mxu0 %v3446_v4  ;;  %1922 = vmatpush1.bf16.msra.mxu1 %v3449_v5  ;;  %v3540_v4 = vld [vmem:[#allocation5 + $0x748] ss:$16 sps:$4 sm:$0xff]   ;;  %v3545_v5 = vld [vmem:[#allocation5 + $0x764] ss:$16 sps:$4 sm:$0xff]  }
  0xe6   :  { %1759 = vmatprep.subr.bf16.mxu0 %v3454_v6  ;;  %1923 = vmatprep.subr.bf16.mxu1 %v3457_v7  ;;  %v3548_v6 = vld [vmem:[#allocation5 + $0x76c] ss:$16 sps:$4 sm:$0xff]   ;;  %v3543_v7 = vld [vmem:[#allocation5 + $0x760] ss:$16 sps:$4 sm:$0xff]  }
  0xe9   :  { %1760 = vmatpush1.bf16.msra.mxu0 %v3452_v8  ;;  %1924 = vmatpush1.bf16.msra.mxu1 %v3455_v9  ;;  %v3546_v8 = vld [vmem:[#allocation5 + $0x768] ss:$16 sps:$4 sm:$0xff]   ;;  %v3551_v9 = vld [vmem:[#allocation5 + $0x784] ss:$16 sps:$4 sm:$0xff]  }
  0xea   :  { %1761 = vmatprep.subr.bf16.mxu0 %v3460_v10  ;;  %1925 = vmatprep.subr.bf16.mxu1 %v3463_v11  ;;  %v3554_v10 = vld [vmem:[#allocation5 + $0x78c] ss:$16 sps:$4 sm:$0xff]   ;;  %v3549_v11 = vld [vmem:[#allocation5 + $0x780] ss:$16 sps:$4 sm:$0xff]  }
  0xed   :  { %1762 = vmatpush1.bf16.msra.mxu0 %v3458_v12  ;;  %1926 = vmatpush1.bf16.msra.mxu1 %v3461_v13  ;;  %v3552_v12 = vld [vmem:[#allocation5 + $0x788] ss:$16 sps:$4 sm:$0xff]   ;;  %v3557_v13 = vld [vmem:[#allocation5 + $0x7a4] ss:$16 sps:$4 sm:$0xff]  }
  0xee   :  { %1763 = vmatprep.subr.bf16.mxu0 %v3466_v14  ;;  %1927 = vmatprep.subr.bf16.mxu1 %v3469_v16  ;;  %v3560_v14 = vld [vmem:[#allocation5 + $0x7ac] ss:$16 sps:$4 sm:$0xff]   ;;  %v3555_v16 = vld [vmem:[#allocation5 + $0x7a0] ss:$16 sps:$4 sm:$0xff]  }
  0xf1   :  { %1764 = vmatpush1.bf16.msra.mxu0 %v3464_v17  ;;  %1928 = vmatpush1.bf16.msra.mxu1 %v3467_v18  ;;  %v3558_v17 = vld [vmem:[#allocation5 + $0x7a8] ss:$16 sps:$4 sm:$0xff]   ;;  %v3563_v18 = vld [vmem:[#allocation5 + $0x7c4] ss:$16 sps:$4 sm:$0xff]  }
  0xf2   :  { %1765 = vmatprep.subr.bf16.mxu0 %v3472_v19  ;;  %1929 = vmatprep.subr.bf16.mxu1 %v3475_v22  ;;  %v3566_v19 = vld [vmem:[#allocation5 + $0x7cc] ss:$16 sps:$4 sm:$0xff]   ;;  %v3561_v22 = vld [vmem:[#allocation5 + $0x7c0] ss:$16 sps:$4 sm:$0xff]  }
  0xf5   :  { %1766 = vmatpush1.bf16.msra.mxu0 %v3470_v23  ;;  %1930 = vmatpush1.bf16.msra.mxu1 %v3473_v24  ;;  %v3564_v23 = vld [vmem:[#allocation5 + $0x7c8] ss:$16 sps:$4 sm:$0xff]   ;;  %v3569_v24 = vld [vmem:[#allocation5 + $0x7e4] ss:$16 sps:$4 sm:$0xff]  }
  0xf6   :  { %1776 = vmatprep.subr.bf16.mxu0 %v3479_v25  ;;  %1940 = vmatprep.subr.bf16.mxu1 %v3482_v26  ;;  %v3572_v25 = vld [vmem:[#allocation5 + $0x7ec] ss:$16 sps:$4 sm:$0xff]   ;;  %v3567_v26 = vld [vmem:[#allocation5 + $0x7e0] ss:$16 sps:$4 sm:$0xff]  }
  0xf8   :  { %1768 = vmatmul.mubr.bf16.vlgmr.msra.gmra.mrb[0].mxu0 %v3807_v21  ;;  %1932 = vmatmul.mubr.bf16.vlgmr.msra.gmra.mrb[0].mxu1 %v3807_v21 }
  0xf9   :  { %1777 = vmatpush1.bf16.msra.mxu0 %v3477_v27  ;;  %1941 = vmatpush1.bf16.msra.mxu1 %v3480_v28  ;;  %v3570_v27 = vld [vmem:[#allocation5 + $0x7e8] ss:$16 sps:$4 sm:$0xff]   ;;  %v3573_v28 = vld [vmem:[#allocation5 + $0x900] ss:$16 sps:$4 sm:$0xff]  }
  0xfa   :  { %1778 = vmatprep.subr.bf16.mxu0 %v3485_v29  ;;  %1942 = vmatprep.subr.bf16.mxu1 %v3488_v30  ;;  %v3574_v29 = vld [vmem:[#allocation5 + $0xb00] ss:$16 sps:$4 sm:$0xff]   ;;  %v362_v30 = vcombine.high %v3807_v21, %v3807_v21 }
  0xfb   :  { %1808 = vmatprep.mubr.bf16.mxu0 %v364_v32  ;;  %1972 = vmatprep.mubr.bf16.mxu1 %v364_v32  ;;  %v3577_v32 = vld [vmem:[#allocation5 + $0x920] ss:$16 sps:$4 sm:$0xff]  }
  0xfc   :  { %v3583_v21 = vld [vmem:[#allocation5 + $0x840] ss:$16 sps:$4 sm:$0xff]  }
  0xfd   :  { %1779 = vmatpush1.bf16.msra.mxu0 %v3483_v31  ;;  %1943 = vmatpush1.bf16.msra.mxu1 %v3486_v15  ;;  %v3575_v31 = vld [vmem:[#allocation5 + $0x800] ss:$16 sps:$4 sm:$0xff]  }
  0xfe   :  { %1780 = vmatprep.subr.bf16.mxu0 %v3491_v33  ;;  %1944 = vmatprep.subr.bf16.mxu1 %v3494_v34  ;;  %v3576_v15 = vld [vmem:[#allocation5 + $0xa00] ss:$16 sps:$4 sm:$0xff]  }
  0xff   :  { %v3578_v33 = vld [vmem:[#allocation5 + $0xb20] ss:$16 sps:$4 sm:$0xff]  }
 0x100   :  { %v3579_v34 = vld [vmem:[#allocation5 + $0x820] ss:$16 sps:$4 sm:$0xff]  }
 0x101   :  { %1781 = vmatpush1.bf16.msra.mxu0 %v3489_v35  ;;  %1945 = vmatpush1.bf16.msra.mxu1 %v3492_v36  ;;  %v3580_v35 = vld [vmem:[#allocation5 + $0xa20] ss:$16 sps:$4 sm:$0xff]  }
 0x102   :  { %1782 = vmatprep.subr.bf16.mxu0 %v3497_v37  ;;  %1946 = vmatprep.subr.bf16.mxu1 %v3500_v38  ;;  %v3581_v36 = vld [vmem:[#allocation5 + $0x940] ss:$16 sps:$4 sm:$0xff]  }
 0x103   :  { %v3582_v37 = vld [vmem:[#allocation5 + $0xb40] ss:$16 sps:$4 sm:$0xff]  }
 0x104   :  { %v3584_v38 = vld [vmem:[#allocation5 + $0xa40] ss:$16 sps:$4 sm:$0xff]  }
 0x105   :  { %1783 = vmatpush1.bf16.msra.mxu0 %v3495_v20  ;;  %1947 = vmatpush1.bf16.msra.mxu1 %v3498_v39  ;;  %v3585_v20 = vld [vmem:[#allocation5 + $0x960] ss:$16 sps:$4 sm:$0xff]  }
 0x106   :  { %1784 = vmatprep.subr.bf16.mxu0 %v3503_v40  ;;  %1948 = vmatprep.subr.bf16.mxu1 %v3506_v41  ;;  %v3586_v39 = vld [vmem:[#allocation5 + $0xb60] ss:$16 sps:$4 sm:$0xff]  }
 0x107   :  { %v3587_v40 = vld [vmem:[#allocation5 + $0x860] ss:$16 sps:$4 sm:$0xff]  }
 0x108   :  { %v3588_v41 = vld [vmem:[#allocation5 + $0xa60] ss:$16 sps:$4 sm:$0xff]  }
 0x109   :  { %1785 = vmatpush1.bf16.msra.mxu0 %v3501_v42  ;;  %1949 = vmatpush1.bf16.msra.mxu1 %v3504_v44  ;;  %v3589_v42 = vld [vmem:[#allocation5 + $0x980] ss:$16 sps:$4 sm:$0xff]  }
 0x10a   :  { %1786 = vmatprep.subr.bf16.mxu0 %v3509_v45  ;;  %1950 = vmatprep.subr.bf16.mxu1 %v3512_v46  ;;  %v3590_v44 = vld [vmem:[#allocation5 + $0xb80] ss:$16 sps:$4 sm:$0xff]  }
 0x10b   :  { %v3591_v45 = vld [vmem:[#allocation5 + $0x880] ss:$16 sps:$4 sm:$0xff]  }
 0x10c   :  { %v3592_v46 = vld [vmem:[#allocation5 + $0xa80] ss:$16 sps:$4 sm:$0xff]  }
 0x10d   :  { %1787 = vmatpush1.bf16.msra.mxu0 %v3507_v47  ;;  %1951 = vmatpush1.bf16.msra.mxu1 %v3510_v48  ;;  %v3593_v47 = vld [vmem:[#allocation5 + $0x9a0] ss:$16 sps:$4 sm:$0xff]  }
 0x10e   :  { %1788 = vmatprep.subr.bf16.mxu0 %v3515_v49  ;;  %1952 = vmatprep.subr.bf16.mxu1 %v3518_v50  ;;  %v3594_v48 = vld [vmem:[#allocation5 + $0xba0] ss:$16 sps:$4 sm:$0xff]  }
 0x10f   :  { %v3595_v49 = vld [vmem:[#allocation5 + $0x8a0] ss:$16 sps:$4 sm:$0xff]  }
 0x110   :  { %v3596_v50 = vld [vmem:[#allocation5 + $0xaa0] ss:$16 sps:$4 sm:$0xff]  }
 0x111   :  { %1789 = vmatpush1.bf16.msra.mxu0 %v3513_v51  ;;  %1953 = vmatpush1.bf16.msra.mxu1 %v3516_v52  ;;  %v3597_v51 = vld [vmem:[#allocation5 + $0x9c0] ss:$16 sps:$4 sm:$0xff]  }
 0x112   :  { %1790 = vmatprep.subr.bf16.mxu0 %v3521_v53  ;;  %1954 = vmatprep.subr.bf16.mxu1 %v3524_v54  ;;  %v3598_v52 = vld [vmem:[#allocation5 + $0xbc0] ss:$16 sps:$4 sm:$0xff]  }
 0x113   :  { %v3599_v53 = vld [vmem:[#allocation5 + $0x8c0] ss:$16 sps:$4 sm:$0xff]  }
 0x114   :  { %v3600_v54 = vld [vmem:[#allocation5 + $0xac0] ss:$16 sps:$4 sm:$0xff]  }
 0x115   :  { %1791 = vmatpush1.bf16.msra.mxu0 %v3519_v55  ;;  %1955 = vmatpush1.bf16.msra.mxu1 %v3522_v56  ;;  %v3601_v55 = vld [vmem:[#allocation5 + $0x9e0] ss:$16 sps:$4 sm:$0xff]  }
 0x116   :  { %1792 = vmatprep.subr.bf16.mxu0 %v3527_v57  ;;  %1956 = vmatprep.subr.bf16.mxu1 %v3530_v58  ;;  %v3602_v56 = vld [vmem:[#allocation5 + $0xbe0] ss:$16 sps:$4 sm:$0xff]  }
 0x117   :  { %v3603_v57 = vld [vmem:[#allocation5 + $0x8e0] ss:$16 sps:$4 sm:$0xff]  }
 0x118   :  { %v3604_v58 = vld [vmem:[#allocation5 + $0xae0] ss:$16 sps:$4 sm:$0xff]  }
 0x119   :  { %1793 = vmatpush1.bf16.msra.mxu0 %v3525_v59  ;;  %1957 = vmatpush1.bf16.msra.mxu1 %v3528_v60  ;;  %v3727_v59 = vmov 0.0   ;;  %v1987_v60 = vsub.s32 0, %v3792_v43 }
 0x11a   :  { %1794 = vmatprep.subr.bf16.mxu0 %v3533_v61  ;;  %1958 = vmatprep.subr.bf16.mxu1 %v3536_v62  ;;  %v1995_v61 = vsub.s32 2, %v3792_v43  ;;  %v1981_v62 = vld [vmem:[#allocation7] ss:$8 sm:$0xf] }
 0x11d   :  { %1795 = vmatpush1.bf16.msra.mxu0 %v3531_v63  ;;  %1959 = vmatpush1.bf16.msra.mxu1 %v3534_v0  ;;  %v1991_v63 = vsub.s32 1, %v3792_v43  ;;  %v1999_v0 = vsub.s32 3, %v3792_v43 }
 0x11e   :  { %1796 = vmatprep.subr.bf16.mxu0 %v3539_v1  ;;  %1960 = vmatprep.subr.bf16.mxu1 %v3542_v2  ;;  %v1983_v1 = vld [vmem:[#allocation7 + $0x5] ss:$8 sm:$0xf]  ;;  %v1988_v2 = vrot.slane %v1981_v62, %v1987_v60 }
 0x121   :  { %1797 = vmatpush1.bf16.msra.mxu0 %v3537_v3  ;;  %1961 = vmatpush1.bf16.msra.mxu1 %v3540_v4  ;;  %v1996_v3 = vrot.slane %v1981_v62, %v1995_v61  ;;  %v1992_v4 = vrot.slane %v1981_v62, %v1991_v63 }
 0x122   :  { %1798 = vmatprep.subr.bf16.mxu0 %v3545_v5  ;;  %1962 = vmatprep.subr.bf16.mxu1 %v3548_v6  ;;  %v2000_v5 = vrot.slane %v1981_v62, %v1999_v0  ;;  %v2013_v6 = vrot.slane %v1983_v1, %v1987_v60 }
 0x125   :  { %1799 = vmatpush1.bf16.msra.mxu0 %v3543_v7  ;;  %1963 = vmatpush1.bf16.msra.mxu1 %v3546_v8  ;;  %v2021_v7 = vrot.slane %v1983_v1, %v1995_v61  ;;  %v2387_v61 = vld [vmem:[#allocation7 + $0x6] ss:$0 sm:$0xff] }
 0x126   :  { %1800 = vmatprep.subr.bf16.mxu0 %v3551_v9  ;;  %1964 = vmatprep.subr.bf16.mxu1 %v3554_v10  ;;  %v2017_v10 = vrot.slane %v1983_v1, %v1991_v63 }
 0x129   :  { %1801 = vmatpush1.bf16.msra.mxu0 %v3549_v11  ;;  %1965 = vmatpush1.bf16.msra.mxu1 %v3552_v12  ;;  %v2025_v11 = vrot.slane %v1983_v1, %v1999_v0 }
 0x12a   :  { %1802 = vmatprep.subr.bf16.mxu0 %v3557_v13  ;;  %1966 = vmatprep.subr.bf16.mxu1 %v3560_v14 }
 0x12d   :  { %1803 = vmatpush1.bf16.msra.mxu0 %v3555_v16  ;;  %1967 = vmatpush1.bf16.msra.mxu1 %v3558_v17 }
 0x12e   :  { %1804 = vmatprep.subr.bf16.mxu0 %v3563_v18  ;;  %1968 = vmatprep.subr.bf16.mxu1 %v3566_v19 }
 0x131   :  { %1805 = vmatpush1.bf16.msra.mxu0 %v3561_v22  ;;  %1969 = vmatpush1.bf16.msra.mxu1 %v3564_v23 }
 0x132   :  { %1806 = vmatprep.subr.bf16.mxu0 %v3569_v24  ;;  %1970 = vmatprep.subr.bf16.mxu1 %v3572_v25 }
 0x135   :  { %1807 = vmatpush1.bf16.msra.mxu0 %v3567_v26  ;;  %1971 = vmatpush1.bf16.msra.mxu1 %v3570_v27 }
 0x136   :  { %3032 = vmatprep.subr.bf16.mxu0 %v3573_v28  ;;  %3054 = vmatprep.subr.bf16.mxu1 %v3574_v29 }
 0x138   :  { %1809 = vmatmul.mubr.bf16.vlgmr.msra.gmra.mrb[0].mxu0 %v362_v30  ;;  %1973 = vmatmul.mubr.bf16.vlgmr.msra.gmra.mrb[0].mxu1 %v362_v30 }
 0x139   :  { %3033 = vmatpush3.bf16.msra.mxu0 %v3575_v31  ;;  %3055 = vmatpush3.bf16.msra.mxu1 %v3576_v15 }
 0x13a   :  { %3034 = vmatprep.subr.bf16.mxu0 %v3577_v32  ;;  %3056 = vmatprep.subr.bf16.mxu1 %v3578_v33 }
 0x13d   :  { %3035 = vmatpush3.bf16.msra.mxu0 %v3579_v34  ;;  %3057 = vmatpush3.bf16.msra.mxu1 %v3580_v35 }
 0x13e   :  { %3036 = vmatprep.subr.bf16.mxu0 %v3581_v36  ;;  %3058 = vmatprep.subr.bf16.mxu1 %v3582_v37  ;;  %v3605_v37 = vld [vmem:[#allocation5 + $0xc00] ss:$16 sps:$4 sm:$0xff]  }
 0x141   :  { %3037 = vmatpush3.bf16.msra.mxu0 %v3583_v21  ;;  %3059 = vmatpush3.bf16.msra.mxu1 %v3584_v38 }
 0x142   :  { %3038 = vmatprep.subr.bf16.mxu0 %v3585_v20  ;;  %3060 = vmatprep.subr.bf16.mxu1 %v3586_v39  ;;  %v3606_v20 = vld [vmem:[#allocation5 + $0xc20] ss:$16 sps:$4 sm:$0xff]  }
 0x143   :  { %v3607_v39 = vld [vmem:[#allocation5 + $0xc40] ss:$16 sps:$4 sm:$0xff]  }
 0x145   :  { %3039 = vmatpush3.bf16.msra.mxu0 %v3587_v40  ;;  %3061 = vmatpush3.bf16.msra.mxu1 %v3588_v41  ;;  %v3608_v40 = vld [vmem:[#allocation5 + $0xc60] ss:$16 sps:$4 sm:$0xff]  }
 0x146   :  { %3040 = vmatprep.subr.bf16.mxu0 %v3589_v42  ;;  %3062 = vmatprep.subr.bf16.mxu1 %v3590_v44  ;;  %v3609_v41 = vld [vmem:[#allocation5 + $0xc80] ss:$16 sps:$4 sm:$0xff]  }
 0x147   :  { %v3610_v42 = vld [vmem:[#allocation5 + $0xca0] ss:$16 sps:$4 sm:$0xff]  }
 0x148   :  { %v3611_v44 = vld [vmem:[#allocation5 + $0xcc0] ss:$16 sps:$4 sm:$0xff]  }
 0x149   :  { %3041 = vmatpush3.bf16.msra.mxu0 %v3591_v45  ;;  %3063 = vmatpush3.bf16.msra.mxu1 %v3592_v46  ;;  %v3612_v45 = vld [vmem:[#allocation5 + $0xce0] ss:$16 sps:$4 sm:$0xff]  }
 0x14a   :  { %3042 = vmatprep.subr.bf16.mxu0 %v3593_v47  ;;  %3064 = vmatprep.subr.bf16.mxu1 %v3594_v48  ;;  %v3613_v46 = vld [vmem:[#allocation5 + $0xd00] ss:$16 sps:$4 sm:$0xff]  }
 0x14b   :  { %v3614_v47 = vld [vmem:[#allocation5 + $0xd20] ss:$16 sps:$4 sm:$0xff]  }
 0x14d   :  { %3043 = vmatpush3.bf16.msra.mxu0 %v3595_v49  ;;  %3065 = vmatpush3.bf16.msra.mxu1 %v3596_v50 }
 0x14e   :  { %3044 = vmatprep.subr.bf16.mxu0 %v3597_v51  ;;  %3066 = vmatprep.subr.bf16.mxu1 %v3598_v52 }
 0x151   :  { %3045 = vmatpush3.bf16.msra.mxu0 %v3599_v53  ;;  %3067 = vmatpush3.bf16.msra.mxu1 %v3600_v54 }
 0x152   :  { %3046 = vmatprep.subr.bf16.mxu0 %v3601_v55  ;;  %3068 = vmatprep.subr.bf16.mxu1 %v3602_v56  ;;  %v2386_v56 = vld [vmem:[#allocation7 + $0x1] ss:$0 sm:$0xff] }
 0x155   :  { %3047 = vmatpush3.bf16.msra.mxu0 %v3603_v57  ;;  %3069 = vmatpush3.bf16.msra.mxu1 %v3604_v58 }
 0x156   :  { %3099 = vmatprep.subr.bf16.mxu0 %v3727_v59  ;;  %3119 = vmatprep.subr.bf16.mxu1 %v3727_v59 }
 0x20b   :  { %v1810_v8 = vpop.f32.mrb[0].mxu0  ;;  %v1974_v9 = vpop.f32.mrb[0].mxu1 }
 0x20c   :  { %v2005_v12 = vmul.f32 %v1988_v2, %v1810_v8  ;;  %v2007_v13 = vmul.f32 %v1996_v3, %v1974_v9  ;;  %v1812_v14 = vpop.f32.mrb[1].mxu0  ;;  %v1976_v16 = vpop.f32.mrb[1].mxu1  ;;  %v3615_v3 = vld [vmem:[#allocation5 + $0xd40] ss:$16 sps:$4 sm:$0xff]  }
 0x20d   :  { %v2006_v17 = vmul.f32 %v1992_v4, %v1812_v14  ;;  %v2008_v18 = vmul.f32 %v2000_v5, %v1976_v16  ;;  %v1814_v19 = vpop.f32.mrb[2].mxu0  ;;  %v1978_v22 = vpop.f32.mrb[2].mxu1  ;;  %v3616_v4 = vld [vmem:[#allocation5 + $0xd60] ss:$16 sps:$4 sm:$0xff]  }
 0x20e   :  { %v2030_v43 = vadd.f32 %v2013_v6, %v2005_v12  ;;  %v2032_v23 = vadd.f32 %v2021_v7, %v2007_v13  ;;  %v1815_v24 = vpop.f32.mrb[3].mxu0  ;;  %v1979_v25 = vpop.f32.mrb[3].mxu1  ;;  %v2498_v5 = vld [vmem:[#allocation7 + $0x2] ss:$0 sm:$0xff]  ;;  %v2499_v7 = vld [vmem:[#allocation7 + $0x7] ss:$0 sm:$0xff] }
 0x20f   :  { %v2031_v26 = vadd.f32 %v2017_v10, %v2006_v17  ;;  %v2033_v27 = vadd.f32 %v2025_v11, %v2008_v18  ;;  %v3617_v16 = vld [vmem:[#allocation5 + $0xd80] ss:$16 sps:$4 sm:$0xff]  }
 0x210   :  { %vm2034_vm0 = vcmp.ge.f32.partialorder %v2030_v43, 0.0  ;;  %v2038_v28 = vmul.f32 0.2, %v2030_v43  ;;  %vm2036_vm1 = vcmp.ge.f32.partialorder %v2032_v23, 0.0  ;;  %v2040_v29 = vmul.f32 0.2, %v2032_v23 }
 0x211   :  { %v2039_v30 = vmul.f32 0.2, %v2031_v26  ;;  %v2041_v31 = vmul.f32 0.2, %v2033_v27  ;;  %vm2035_vm2 = vcmp.ge.f32.partialorder %v2031_v26, 0.0  ;;  %vm2037_vm3 = vcmp.ge.f32.partialorder %v2033_v27, 0.0 }
 0x212   :  { %v2042_v15 = vsel %vm2034_vm0, %v2030_v43, %v2038_v28  ;;  %v2044_v32 = vsel %vm2036_vm1, %v2032_v23, %v2040_v29  ;;  %v3618_v18 = vld [vmem:[#allocation5 + $0xda0] ss:$16 sps:$4 sm:$0xff]  }
 0x213   :  { %v2043_v33 = vsel %vm2035_vm2, %v2031_v26, %v2039_v30  ;;  %v2045_v34 = vsel %vm2037_vm3, %v2033_v27, %v2041_v31  ;;  %v2046_v21 = vpack.c.bf16 %v2042_v15, %v2042_v15  ;;  %v2048_v38 = vpack.c.bf16 %v2044_v32, %v2044_v32  ;;  %v3619_v19 = vld [vmem:[#allocation5 + $0xdc0] ss:$16 sps:$4 sm:$0xff]   ;;  %v2698_v26 = vld [vmem:[%s3869_s3] sm:$0x3]  ;;  %s3730_s3 = smov [#allocation8]  }
 0x214   :  { %v2047_v35 = vpack.c.bf16 %v2043_v33, %v2043_v33  ;;  %v2049_v36 = vpack.c.bf16 %v2045_v34, %v2045_v34  ;;  %v3620_v22 = vld [vmem:[#allocation5 + $0xde0] ss:$16 sps:$4 sm:$0xff]   ;;  %v3729_v27 = vmov 0   ;;  %s2713_s28 = sshll.u32 %s3730_s3, 4  ;;  %s2714_s28 = int_to_ptr.vmem [resolvable:$true] %s2713_s28 }
 0x215   :  { %v3621_v43 = vld [vmem:[#allocation5 + $0xe00] ss:$16 sps:$4 sm:$0xff]   ;;  %3187 = vset.pattern.permute.xlu0 %v3729_v27  ;;  %s3691_s29 = scalar_lea.vmem %s2714_s28, 32  ;;  %p3696_p11 = scmp.lt.s32.totalorder %s2714_s28, %s2714_s28 }
 0x216   :  { %2338 = vmatprep.mubr.bf16.mxu0 %v2047_v35  ;;  %2378 = vmatprep.mubr.bf16.mxu1 %v2049_v36  ;;  %v3622_v23 = vld [vmem:[#allocation5 + $0xe20] ss:$16 sps:$4 sm:$0xff]   ;;  %p3692_p10 = scmp.ne.s32.totalorder %s2714_s28, %s3691_s29  ;;  %p3697_p12 = scmp.lt.s32.totalorder %s3691_s29, %s3691_s29 }
 0x217   :  { %2339 = vmatmul.mubr.bf16.vlgmr.msra.gmra.mrb[4].mxu0 %v2046_v21  ;;  %2379 = vmatmul.mubr.bf16.vlgmr.msra.gmra.mrb[4].mxu1 %v2048_v38  ;;  %v3623_v24 = vld [vmem:[#allocation5 + $0xe40] ss:$16 sps:$4 sm:$0xff]  }
 0x218   :  { %3100 = vmatpush3.bf16.msra.mxu0 %v3605_v37  ;;  %3115 = vmatprep.mubr.msk.bf16.mxu0 %vm3728_vm4, %v3727_v59  ;;  %v3624_v25 = vld [vmem:[#allocation5 + $0xe60] ss:$16 sps:$4 sm:$0xff]   ;;  %v2694_v37 = vld [vmem:[#allocation7 + $0x4] ss:$0 sm:$0xff]  ;;  %p3698_p13 = por %p3697_p12, %p3696_p11 }
 0x219   :  { %3101 = vmatprep.subr.bf16.mxu0 %v3727_v59  ;;  %3127 = vmatprep.mubr.msk.bf16.mxu1 %vm3728_vm4, %v3727_v59  ;;  %v2582_v28 = vld [vmem:[#allocation7 + $0x3] ss:$0 sm:$0xff]  ;;  %v2583_v30 = vld [vmem:[#allocation7 + $0x20] ss:$0 sm:$0xff]  ;;  %v2695_v38 = vld [vmem:[#allocation7 + $0x21] ss:$0 sm:$0xff] }
 0x21a   :  { %3120 = vmatpush3.bf16.msra.mxu1 %v3613_v46  ;;  %2701 = vperm.xlu0 %3187, %v2698_v26   ;;  %p3699_p0 = pnand %p3698_p13, %p3692_p10 }
 0x21b   :  { %3121 = vmatprep.subr.bf16.mxu1 %v3727_v59 }
 0x21c   :  { %3102 = vmatpush3.bf16.msra.mxu0 %v3606_v20 }
 0x21d   :  { %3103 = vmatprep.subr.bf16.mxu0 %v3727_v59 }
 0x21e   :  { %3122 = vmatpush3.bf16.msra.mxu1 %v3614_v47 }
 0x21f   :  { %3123 = vmatprep.subr.bf16.mxu1 %v3727_v59 }
 0x220   :  { %3104 = vmatpush3.bf16.msra.mxu0 %v3607_v39 }
 0x221   :  { %3105 = vmatprep.subr.bf16.mxu0 %v3727_v59 }
 0x222   :  { %3124 = vmatpush3.bf16.msra.mxu1 %v3615_v3 }
 0x223   :  { %3125 = vmatprep.subr.bf16.mxu1 %v3727_v59 }
 0x224   :  { %3106 = vmatpush3.bf16.msra.mxu0 %v3608_v40 }
 0x225   :  { %3107 = vmatprep.subr.bf16.mxu0 %v3727_v59 }
 0x226   :  { %3126 = vmatpush3.bf16.msra.mxu1 %v3616_v4 }
 0x227   :  { %3131 = vmatprep.subr.bf16.mxu1 %v3727_v59 }
 0x228   :  { %3108 = vmatpush3.bf16.msra.mxu0 %v3609_v41 }
 0x229   :  { %3109 = vmatprep.subr.bf16.mxu0 %v3727_v59 }
 0x22c   :  { %3110 = vmatpush3.bf16.msra.mxu0 %v3610_v42 }
 0x22d   :  { %3111 = vmatprep.subr.bf16.mxu0 %v3727_v59 }
 0x230   :  { %3112 = vmatpush3.bf16.msra.mxu0 %v3611_v44 }
 0x231   :  { %3113 = vmatprep.subr.bf16.mxu0 %v3727_v59 }
 0x234   :  { %3114 = vmatpush3.bf16.msra.mxu0 %v3612_v45 }
 0x299   :  { %v2702_v41 = vpop.permute.xlu0 %2701 }
 0x2ea   :  { %v3048_v48 = vpop.f32.mrb[4].mxu0  ;;  %v3070_v49 = vpop.f32.mrb[4].mxu1 }
 0x2eb   :  { %v3049_v50 = vpop.f32.mrb[5].mxu0  ;;  %v3071_v51 = vpop.f32.mrb[5].mxu1 }
 0x2ec   :  { %v3050_v52 = vadd.f32 %v3049_v50, %v3048_v48  ;;  %v3072_v53 = vadd.f32 %v3071_v51, %v3070_v49  ;;  %v3051_v54 = vpop.f32.mrb[6].mxu0  ;;  %v3073_v55 = vpop.f32.mrb[6].mxu1 }
 0x2ed   :  { %v3052_v57 = vpop.f32.mrb[7].mxu0  ;;  %v3074_v58 = vpop.f32.mrb[7].mxu1 }
 0x2ee   :  { %v2381_v60 = vadd.f32 %v3072_v53, %v3050_v52 }
 0x2f0   :  { %v2388_v62 = vmul.f32 %v2386_v56, %v2381_v60 }
 0x2f2   :  { %v2389_v63 = vadd.f32 %v2388_v62, %v2387_v61 }
 0x2f4   :  { %v2391_v0 = vmul.f32 0.2, %v2389_v63  ;;  %vm2390_vm5 = vcmp.ge.f32.partialorder %v2389_v63, 0.0 }
 0x2f6   :  { %v2392_v1 = vsel %vm2390_vm5, %v2389_v63, %v2391_v0 }
 0x2f7   :  { %v2393_v2 = vpack.c.bf16 %v2392_v1, %v2392_v1 }
 0x2f9   :  { %3116 = vmatmul.mubr.bf16.vlgmr.msra.gmra.mrb[8].mxu0 %v2393_v2 }
 0x3cc   :  { %v2492_v6 = vpop.f32.mrb[8].mxu0 }
 0x3cd   :  { %v2500_v8 = vmul.f32 %v2498_v5, %v2492_v6  ;;  %v3117_v9 = vpop.f32.mrb[9].mxu0 }
 0x3ce   :  { %v2495_v10 = vpop.f32.mrb[10].mxu0 }
 0x3cf   :  { %v2501_v11 = vadd.f32 %v2500_v8, %v2499_v7  ;;  %v3118_v12 = vpop.f32.mrb[11].mxu0 }
 0x3d1   :  { %vm2502_vm6 = vcmp.ge.f32.partialorder %v2501_v11, 0.0  ;;  %v2503_v13 = vmul.f32 0.2, %v2501_v11 }
 0x3d3   :  { %v2504_v14 = vsel %vm2502_vm6, %v2501_v11, %v2503_v13 }
 0x3d4   :  { %v2505_v17 = vpack.c.bf16 %v2504_v14, %v2504_v14 }
 0x3d6   :  { %3128 = vmatmul.mubr.msk.bf16.vlgmr.msra.gmra.mrb[8].mxu1 %vm2538_vm7, %v2505_v17 }
 0x3d7   :  { %3132 = vmatpush3.bf16.msra.mxu1 %v3617_v16  ;;  %3147 = vmatprep.mubr.msk.bf16.mxu1 %vm3728_vm4, %v3727_v59 }
 0x3d8   :  { %3133 = vmatprep.subr.bf16.mxu1 %v3727_v59 }
 0x3db   :  { %3134 = vmatpush3.bf16.msra.mxu1 %v3618_v18 }
 0x3dc   :  { %3135 = vmatprep.subr.bf16.mxu1 %v3727_v59 }
 0x3df   :  { %3136 = vmatpush3.bf16.msra.mxu1 %v3619_v19 }
 0x3e0   :  { %3137 = vmatprep.subr.bf16.mxu1 %v3727_v59 }
 0x3e3   :  { %3138 = vmatpush3.bf16.msra.mxu1 %v3620_v22 }
 0x3e4   :  { %3139 = vmatprep.subr.bf16.mxu1 %v3727_v59 }
 0x3e7   :  { %3140 = vmatpush3.bf16.msra.mxu1 %v3621_v43 }
 0x3e8   :  { %3141 = vmatprep.subr.bf16.mxu1 %v3727_v59 }
 0x3eb   :  { %3142 = vmatpush3.bf16.msra.mxu1 %v3622_v23 }
 0x3ec   :  { %3143 = vmatprep.subr.bf16.mxu1 %v3727_v59 }
 0x3ef   :  { %3144 = vmatpush3.bf16.msra.mxu1 %v3623_v24 }
 0x3f0   :  { %3145 = vmatprep.subr.bf16.mxu1 %v3727_v59 }
 0x3f3   :  { %3146 = vmatpush3.bf16.msra.mxu1 %v3624_v25 }
 0x4a9   :  { %v2576_v29 = vpop.f32.mrb[8].mxu1 }
 0x4aa   :  { %v2584_v31 = vmul.f32 %v2582_v28, %v2576_v29  ;;  %v3129_v15 = vpop.f32.mrb[9].mxu1 }
 0x4ab   :  { %v2579_v32 = vpop.f32.mrb[10].mxu1 }
 0x4ac   :  { %v2585_v33 = vadd.f32 %v2584_v31, %v2583_v30  ;;  %v3130_v34 = vpop.f32.mrb[11].mxu1 }
 0x4ae   :  { %vm2586_vm8 = vcmp.ge.f32.partialorder %v2585_v33, 0.0  ;;  %v2587_v35 = vmul.f32 0.2, %v2585_v33 }
 0x4b0   :  { %v2588_v59 = vsel %vm2586_vm8, %v2585_v33, %v2587_v35 }
 0x4b1   :  { %v2589_v36 = vpack.c.bf16 %v2588_v59, %v2588_v59 }
 0x4b3   :  { %3148 = vmatmul.mubr.bf16.vlgmr.msra.gmra.mrb[12].mxu1 %v2589_v36 }
 0x586   :  { %v2688_v21 = vpop.f32.mrb[12].mxu1 }
 0x587   :  { %v2696_v20 = vmul.f32 %v2694_v37, %v2688_v21  ;;  %v3149_v39 = vpop.f32.mrb[13].mxu1 }
 0x588   :  { %v2691_v40 = vpop.f32.mrb[14].mxu1 }
 0x589   :  { %v3150_v42 = vpop.f32.mrb[15].mxu1  ;;  %v2697_v44 = vadd.f32 %v2696_v20, %v2695_v38 }
 0x58b   :  { %v2704_v45 = vmul.f32 %v2702_v41, %v2697_v44 }
 0x58d   :  { %2706 = vst.msk [vmem:[#allocation8] sm:$0x3] %vm2705_vm9, %v2704_v45 }
 0x58e   :  { %3702 = shalt.err (!%p3699_p0)
}
 0x58f   :  { %s3703_s6 = scalar_lea.hbm %s3870_s4, 32 }
 0x590   :  { %p3704_p1 = scmp.ne.s32.totalorder %s3870_s4, %s3703_s6  ;;  %p3707_p2 = scmp.lt.u32.totalorder %s3703_s6, %s3870_s4 }
 0x592   :  { %p3709_p3 = pnand %p3707_p2, %p3704_p1 }
 0x594   :  { %3712 = shalt.err (!%p3709_p3)
}
 0x595   :  { %2716 = dma.vmem_to_hbm [thread:$0]  %s2714_s28, 32, %s3870_s4, [#allocation4]  }
 0x596   :  { %3717 = dma.done.wait [#allocation4], 32  }
 0x597   :  { %3718 = vsyncadd [#allocation4], 4294967264 }
 0x598   :  { %2720 = vsyncpa [#allocation3], 1 }
 0x599   :  { %2721 = vsyncpa [#allocation6], 1 }
 0x59a   :  { %2722 = vsyncpa [#allocation4], 1 }

</bundles_post_ra>
